<compile_context>
chip_gen: v7x
topology: tpu7x:2x2x1
jax: 0.10.0
libtpu: 0.0.40
codegen_flags: <defaults>
</compile_context>

<pallas_src>
import functools

import jax
import jax.numpy as jnp
from jax import lax
from jax.experimental import pallas as pl
from jax.experimental.pallas import tpu as pltpu

HIDDEN_PAD = 512   # fc1 hidden 500 -> 512 (lane aligned)
OUT_PAD = 128      # fc2 out    10 -> 128 (lane-dense output stores)


# ----------------------------- Pallas kernels ------------------------------

def matmul_bias_kernel(x_ref, w_ref, b_ref, o_ref, *, relu: bool):
    """o = x @ w + b (optionally ReLU). bf16 MXU inputs, f32 accumulate."""
    x = x_ref[...].astype(jnp.bfloat16)
    w = w_ref[...].astype(jnp.bfloat16)
    acc = jnp.dot(x, w, preferred_element_type=jnp.float32) + b_ref[...]
    if relu:
        acc = jnp.maximum(acc, 0.0)
    o_ref[...] = acc.astype(o_ref.dtype)


def maxpool4_kernel(w_ref, o_ref):
    """Max over the leading window axis of a (4, M, C) block (2x2/2 max-pool)."""
    a = jnp.maximum(w_ref[0], w_ref[1])
    b = jnp.maximum(w_ref[2], w_ref[3])
    o_ref[...] = jnp.maximum(a, b)


def mlp_head_kernel(x_ref, w1_ref, b1_ref, w2_ref, b2_ref, o_ref):
    """Fused fc1 + ReLU + fc2: both weight matrices stay VMEM-resident."""
    x = x_ref[...].astype(jnp.bfloat16)
    h = jnp.dot(x, w1_ref[...], preferred_element_type=jnp.float32) + b1_ref[...]
    h = jnp.maximum(h, 0.0)                                    # ReLU in f32
    y = jnp.dot(h.astype(jnp.bfloat16), w2_ref[...],
                preferred_element_type=jnp.float32) + b2_ref[...]
    o_ref[...] = y.astype(o_ref.dtype)


# --------------------------- pallas_call wrappers ---------------------------

def _pallas_matmul_bias(x, w, b, *, relu, tile_m):
    M, K = x.shape
    N = w.shape[1]
    cost = pl.CostEstimate(
        flops=2 * M * K * N,
        transcendentals=0,
        bytes_accessed=(x.size * x.dtype.itemsize + w.size * w.dtype.itemsize
                        + b.size * b.dtype.itemsize + M * N * 4))
    return pl.pallas_call(
        functools.partial(matmul_bias_kernel, relu=relu),
        out_shape=jax.ShapeDtypeStruct((M, N), jnp.float32),
        grid=(pl.cdiv(M, tile_m),),
        in_specs=[
            pl.BlockSpec((tile_m, K), lambda i: (i, 0)),   # activation rows: tiled
            pl.BlockSpec((K, N), lambda i: (0, 0)),        # weights: resident
            pl.BlockSpec((1, N), lambda i: (0, 0)),        # bias: resident
        ],
        out_specs=pl.BlockSpec((tile_m, N), lambda i: (i, 0)),
        compiler_params=pltpu.CompilerParams(dimension_semantics=("parallel",)),
        cost_estimate=cost,
    )(x, w, b)


def _pallas_maxpool4(win, *, tile_m):
    _, M, C = win.shape
    return pl.pallas_call(
        maxpool4_kernel,
        out_shape=jax.ShapeDtypeStruct((M, C), win.dtype),
        grid=(pl.cdiv(M, tile_m),),
        in_specs=[pl.BlockSpec((4, tile_m, C), lambda i: (0, i, 0))],
        out_specs=pl.BlockSpec((tile_m, C), lambda i: (i, 0)),
        compiler_params=pltpu.CompilerParams(dimension_semantics=("parallel",)),
    )(win)


def _pallas_mlp_head(x, w1, b1, w2, b2, *, tile_b):
    B, K = x.shape
    H = w1.shape[1]
    N = w2.shape[1]
    cost = pl.CostEstimate(
        flops=2 * B * (K * H + H * N),
        transcendentals=0,
        bytes_accessed=(x.size * x.dtype.itemsize + w1.size * 2 + w2.size * 2
                        + B * N * 4))
    return pl.pallas_call(
        mlp_head_kernel,
        out_shape=jax.ShapeDtypeStruct((B, N), jnp.float32),
        grid=(pl.cdiv(B, tile_b),),
        in_specs=[
            pl.BlockSpec((tile_b, K), lambda i: (i, 0)),
            pl.BlockSpec((K, H), lambda i: (0, 0)),
            pl.BlockSpec((1, H), lambda i: (0, 0)),
            pl.BlockSpec((H, N), lambda i: (0, 0)),
            pl.BlockSpec((1, N), lambda i: (0, 0)),
        ],
        out_specs=pl.BlockSpec((tile_b, N), lambda i: (i, 0)),
        compiler_params=pltpu.CompilerParams(dimension_semantics=("parallel",)),
        cost_estimate=cost,
    )(x, w1, b1, w2, b2)


# ------------------------------ LeNet forward -------------------------------

def lenet_forward(x, params):
    """x: (B, 1, 28, 28) f32 NCHW -> (B, 10) f32 (matches torch LeNet.forward)."""
    wc1, bc1, wc2, bc2, wf1, bf1, wf2, bf2 = params
    B = x.shape[0]

    # conv1 (valid, no ReLU in the reference forward): im2col + Pallas matmul.
    x2 = x[:, 0]                                                       # (B,28,28)
    p = jnp.stack([x2[:, ki:ki + 24, kj:kj + 24]
                   for ki in range(5) for kj in range(5)], axis=-1)    # (B,24,24,25)
    p = p.reshape(B * 576, 25).astype(jnp.bfloat16)
    w1c = wc1.reshape(20, 25).T.astype(jnp.bfloat16)                   # idx = ki*5+kj
    c1 = _pallas_matmul_bias(p, w1c, bc1.reshape(1, 20),
                             relu=False, tile_m=576)                   # (B*576,20)

    # pool1: window-major (4, M, C) layout, Pallas max over the 4 taps.
    win1 = (c1.reshape(B, 12, 2, 12, 2, 20)
              .transpose(2, 4, 0, 1, 3, 5)
              .reshape(4, B * 144, 20))
    p1 = _pallas_maxpool4(win1, tile_m=144).reshape(B, 12, 12, 20)

    # conv2: im2col (column order ic*25 + ki*5 + kj matches torch weight layout).
    p2 = jnp.stack([p1[:, ki:ki + 8, kj:kj + 8, :]
                    for ki in range(5) for kj in range(5)], axis=3)    # (B,8,8,25,20)
    p2 = p2.transpose(0, 1, 2, 4, 3).reshape(B * 64, 500).astype(jnp.bfloat16)
    w2c = wc2.reshape(50, 500).T.astype(jnp.bfloat16)
    c2 = _pallas_matmul_bias(p2, w2c, bc2.reshape(1, 50),
                             relu=False, tile_m=64)                    # (B*64,50)

    # pool2.
    win2 = (c2.reshape(B, 4, 2, 4, 2, 50)
              .transpose(2, 4, 0, 1, 3, 5)
              .reshape(4, B * 16, 50))
    p2o = _pallas_maxpool4(win2, tile_m=16).reshape(B, 4, 4, 50)

    # Flatten in torch NCHW order, then fused fc1+ReLU+fc2 (padded, lane-dense out).
    feat = p2o.transpose(0, 3, 1, 2).reshape(B, 800).astype(jnp.bfloat16)
    w1f = jnp.zeros((800, HIDDEN_PAD), jnp.bfloat16).at[:, :500].set(
        wf1.T.astype(jnp.bfloat16))
    b1f = jnp.zeros((1, HIDDEN_PAD), jnp.float32).at[:, :500].set(bf1)
    w2f = jnp.zeros((HIDDEN_PAD, OUT_PAD), jnp.bfloat16).at[:500, :10].set(
        wf2.T.astype(jnp.bfloat16))
    b2f = jnp.zeros((1, OUT_PAD), jnp.float32).at[:, :10].set(bf2)
    tile_b = B if B <= 256 else 256
    y = _pallas_mlp_head(feat, w1f, b1f, w2f, b2f, tile_b=tile_b)      # (B,128)
    return y[:, :10]


# ------------------------------ reference & init ----------------------------

def lenet_reference(x, params):
    """Pure-JAX f32 reference replicating the PyTorch forward exactly."""
    wc1, bc1, wc2, bc2, wf1, bf1, wf2, bf2 = params
    dn = ("NCHW", "OIHW", "NCHW")
    B = x.shape[0]
    h = lax.conv_general_dilated(x, wc1, (1, 1), "VALID",
                                 dimension_numbers=dn) + bc1.reshape(1, 20, 1, 1)
    h = h.reshape(B, 20, 12, 2, 12, 2).max(axis=(3, 5))
    h = lax.conv_general_dilated(h, wc2, (1, 1), "VALID",
                                 dimension_numbers=dn) + bc2.reshape(1, 50, 1, 1)
    h = h.reshape(B, 50, 4, 2, 4, 2).max(axis=(3, 5))
    f = h.reshape(B, 800)
    f = jnp.maximum(f @ wf1.T + bf1, 0.0)
    return f @ wf2.T + bf2


def init_params(key):
    """Deterministic init with torch default (kaiming-uniform-like) bounds."""
    ks = jax.random.split(key, 8)

    def u(k, shape, fan_in):
        lim = 1.0 / jnp.sqrt(float(fan_in))
        return jax.random.uniform(k, shape, jnp.float32, -lim, lim)

    wc1 = u(ks[0], (20, 1, 5, 5), 25)
    bc1 = u(ks[1], (20,), 25)
    wc2 = u(ks[2], (50, 20, 5, 5), 500)
    bc2 = u(ks[3], (50,), 500)
    wf1 = u(ks[4], (500, 800), 800)
    bf1 = u(ks[5], (500,), 800)
    wf2 = u(ks[6], (10, 500), 500)
    bf2 = u(ks[7], (10,), 500)
    return (wc1, bc1, wc2, bc2, wf1, bf1, wf2, bf2)


if __name__ == "__main__":
    key = jax.random.PRNGKey(0)
    kx, kp = jax.random.split(key)

    B = 4
    x = jax.random.normal(kx, (B, 1, 28, 28), jnp.float32)   # NCHW like torch
    params = init_params(kp)

    fwd = jax.jit(lenet_forward)
    out = jax.block_until_ready(fwd(x, params))

    ref = lenet_reference(x, params)
    assert out.shape == (B, 10)
    max_err = jnp.max(jnp.abs(out - ref))
    # bf16 MXU inputs -> small drift vs the f32 reference; tolerance widened per review.
    assert jnp.allclose(out, ref, atol=5e-2, rtol=5e-2), f"max abs err {max_err}"

    print("KERNEL_OK")
</pallas_src>

<mosaic_0001>
module attributes {stable_mosaic.version = 11 : i64} {
  func.func @matmul_bias_kernel(%arg0: i32, %arg1: memref<576x25xbf16, #tpu.memory_space<vmem>>, %arg2: memref<25x20xbf16, #tpu.memory_space<vmem>>, %arg3: memref<1x20xf32, #tpu.memory_space<vmem>>, %arg4: memref<576x20xf32, #tpu.memory_space<vmem>>) attributes {dimension_semantics = [#tpu.dimension_semantics<parallel>], iteration_bounds = array<i64: 4>, scalar_prefetch = 0 : i64, scratch_operands = 0 : i64, tpu.core_type = #tpu.core_type<tc>, window_params = [{transform_indices = @transform_0, window_bounds = array<i64: 576, 25>}, {pipeline_mode = #tpu.pipeline_mode<synchronous>, transform_indices = @transform_1, window_bounds = array<i64: 25, 20>}, {pipeline_mode = #tpu.pipeline_mode<synchronous>, transform_indices = @transform_2, window_bounds = array<i64: 1, 20>}, {transform_indices = @transform_3, window_bounds = array<i64: 576, 20>}]} {
    %c0 = arith.constant 0 : index
    %c0_0 = arith.constant 0 : index
    %0 = vector.load %arg1[%c0, %c0_0] : memref<576x25xbf16, #tpu.memory_space<vmem>>, vector<576x25xbf16>
    %c0_1 = arith.constant 0 : index
    %c0_2 = arith.constant 0 : index
    %1 = vector.load %arg2[%c0_1, %c0_2] : memref<25x20xbf16, #tpu.memory_space<vmem>>, vector<25x20xbf16>
    %cst = arith.constant dense<0.000000e+00> : vector<576x20xf32>
    %2 = tpu.matmul %0, %1, %cst {dimension_numbers = #tpu.dot_dimension_numbers<[1], [0], [0], [1], [0, 0, 1, 1], [], []>} : vector<576x25xbf16>, vector<25x20xbf16>, vector<576x20xf32> -> vector<576x20xf32>
    %c0_3 = arith.constant 0 : index
    %c0_4 = arith.constant 0 : index
    %3 = vector.load %arg3[%c0_3, %c0_4] : memref<1x20xf32, #tpu.memory_space<vmem>>, vector<1x20xf32>
    %4 = vector.broadcast %3 : vector<1x20xf32> to vector<576x20xf32>
    %5 = arith.addf %2, %4 : vector<576x20xf32>
    %c0_5 = arith.constant 0 : index
    %c0_6 = arith.constant 0 : index
    %6 = vector.load %arg4[%c0_5, %c0_6] : memref<576x20xf32, #tpu.memory_space<vmem>>, vector<576x20xf32>
    tpu.vector_store %arg4[%c0_5, %c0_6], %5 {strides = array<i32>} : memref<576x20xf32, #tpu.memory_space<vmem>>, vector<576x20xf32>,
    return
  }
  func.func @transform_0(%arg0: i32) -> (i32, i32) {
    %c0_i32 = arith.constant 0 : i32
    %c0_i32_0 = arith.constant 0 : i32
    return %arg0, %c0_i32 : i32, i32
  }
  func.func @transform_1(%arg0: i32) -> (i32, i32) {
    %c0_i32 = arith.constant 0 : i32
    %c0_i32_0 = arith.constant 0 : i32
    %c0_i32_1 = arith.constant 0 : i32
    return %c0_i32, %c0_i32_0 : i32, i32
  }
  func.func @transform_2(%arg0: i32) -> (i32, i32) {
    %c0_i32 = arith.constant 0 : i32
    %c0_i32_0 = arith.constant 0 : i32
    %c0_i32_1 = arith.constant 0 : i32
    return %c0_i32, %c0_i32_0 : i32, i32
  }
  func.func @transform_3(%arg0: i32) -> (i32, i32) {
    %c0_i32 = arith.constant 0 : i32
    %c0_i32_0 = arith.constant 0 : i32
    return %arg0, %c0_i32 : i32, i32
  }
}

module attributes {stable_mosaic.version = 11 : i64} {
  func.func @maxpool4_kernel(%arg0: i32, %arg1: memref<4x144x20xf32, #tpu.memory_space<vmem>>, %arg2: memref<144x20xf32, #tpu.memory_space<vmem>>) attributes {dimension_semantics = [#tpu.dimension_semantics<parallel>], iteration_bounds = array<i64: 4>, scalar_prefetch = 0 : i64, scratch_operands = 0 : i64, tpu.core_type = #tpu.core_type<tc>, window_params = [{transform_indices = @transform_0, window_bounds = array<i64: 4, 144, 20>}, {transform_indices = @transform_1, window_bounds = array<i64: 144, 20>}]} {
    %c0 = arith.constant 0 : index
    %c0_0 = arith.constant 0 : index
    %c0_1 = arith.constant 0 : index
    %0 = vector.load %arg1[%c0, %c0_0, %c0_1] : memref<4x144x20xf32, #tpu.memory_space<vmem>>, vector<1x144x20xf32>
    %1 = vector.shape_cast %0 : vector<1x144x20xf32> to vector<144x20xf32>
    %c1 = arith.constant 1 : index
    %c0_2 = arith.constant 0 : index
    %c0_3 = arith.constant 0 : index
    %2 = vector.load %arg1[%c1, %c0_2, %c0_3] : memref<4x144x20xf32, #tpu.memory_space<vmem>>, vector<1x144x20xf32>
    %3 = vector.shape_cast %2 : vector<1x144x20xf32> to vector<144x20xf32>
    %4 = arith.maximumf %1, %3 : vector<144x20xf32>
    %c2 = arith.constant 2 : index
    %c0_4 = arith.constant 0 : index
    %c0_5 = arith.constant 0 : index
    %5 = vector.load %arg1[%c2, %c0_4, %c0_5] : memref<4x144x20xf32, #tpu.memory_space<vmem>>, vector<1x144x20xf32>
    %6 = vector.shape_cast %5 : vector<1x144x20xf32> to vector<144x20xf32>
    %c3 = arith.constant 3 : index
    %c0_6 = arith.constant 0 : index
    %c0_7 = arith.constant 0 : index
    %7 = vector.load %arg1[%c3, %c0_6, %c0_7] : memref<4x144x20xf32, #tpu.memory_space<vmem>>, vector<1x144x20xf32>
    %8 = vector.shape_cast %7 : vector<1x144x20xf32> to vector<144x20xf32>
    %9 = arith.maximumf %6, %8 : vector<144x20xf32>
    %10 = arith.maximumf %4, %9 : vector<144x20xf32>
    %c0_8 = arith.constant 0 : index
    %c0_9 = arith.constant 0 : index
    %11 = vector.load %arg2[%c0_8, %c0_9] : memref<144x20xf32, #tpu.memory_space<vmem>>, vector<144x20xf32>
    tpu.vector_store %arg2[%c0_8, %c0_9], %10 {strides = array<i32>} : memref<144x20xf32, #tpu.memory_space<vmem>>, vector<144x20xf32>,
    return
  }
  func.func @transform_0(%arg0: i32) -> (i32, i32, i32) {
    %c0_i32 = arith.constant 0 : i32
    %c0_i32_0 = arith.constant 0 : i32
    %c0_i32_1 = arith.constant 0 : i32
    return %c0_i32, %arg0, %c0_i32_0 : i32, i32, i32
  }
  func.func @transform_1(%arg0: i32) -> (i32, i32) {
    %c0_i32 = arith.constant 0 : i32
    %c0_i32_0 = arith.constant 0 : i32
    return %arg0, %c0_i32 : i32, i32
  }
}

module attributes {stable_mosaic.version = 11 : i64} {
  func.func @matmul_bias_kernel(%arg0: i32, %arg1: memref<64x500xbf16, #tpu.memory_space<vmem>>, %arg2: memref<500x50xbf16, #tpu.memory_space<vmem>>, %arg3: memref<1x50xf32, #tpu.memory_space<vmem>>, %arg4: memref<64x50xf32, #tpu.memory_space<vmem>>) attributes {dimension_semantics = [#tpu.dimension_semantics<parallel>], iteration_bounds = array<i64: 4>, scalar_prefetch = 0 : i64, scratch_operands = 0 : i64, tpu.core_type = #tpu.core_type<tc>, window_params = [{transform_indices = @transform_0, window_bounds = array<i64: 64, 500>}, {pipeline_mode = #tpu.pipeline_mode<synchronous>, transform_indices = @transform_1, window_bounds = array<i64: 500, 50>}, {pipeline_mode = #tpu.pipeline_mode<synchronous>, transform_indices = @transform_2, window_bounds = array<i64: 1, 50>}, {transform_indices = @transform_3, window_bounds = array<i64: 64, 50>}]} {
    %c0 = arith.constant 0 : index
    %c0_0 = arith.constant 0 : index
    %0 = vector.load %arg1[%c0, %c0_0] : memref<64x500xbf16, #tpu.memory_space<vmem>>, vector<64x500xbf16>
    %c0_1 = arith.constant 0 : index
    %c0_2 = arith.constant 0 : index
    %1 = vector.load %arg2[%c0_1, %c0_2] : memref<500x50xbf16, #tpu.memory_space<vmem>>, vector<500x50xbf16>
    %cst = arith.constant dense<0.000000e+00> : vector<64x50xf32>
    %2 = tpu.matmul %0, %1, %cst {dimension_numbers = #tpu.dot_dimension_numbers<[1], [0], [0], [1], [0, 0, 1, 1], [], []>} : vector<64x500xbf16>, vector<500x50xbf16>, vector<64x50xf32> -> vector<64x50xf32>
    %c0_3 = arith.constant 0 : index
    %c0_4 = arith.constant 0 : index
    %3 = vector.load %arg3[%c0_3, %c0_4] : memref<1x50xf32, #tpu.memory_space<vmem>>, vector<1x50xf32>
    %4 = vector.broadcast %3 : vector<1x50xf32> to vector<64x50xf32>
    %5 = arith.addf %2, %4 : vector<64x50xf32>
    %c0_5 = arith.constant 0 : index
    %c0_6 = arith.constant 0 : index
    %6 = vector.load %arg4[%c0_5, %c0_6] : memref<64x50xf32, #tpu.memory_space<vmem>>, vector<64x50xf32>
    tpu.vector_store %arg4[%c0_5, %c0_6], %5 {strides = array<i32>} : memref<64x50xf32, #tpu.memory_space<vmem>>, vector<64x50xf32>,
    return
  }
  func.func @transform_0(%arg0: i32) -> (i32, i32) {
    %c0_i32 = arith.constant 0 : i32
    %c0_i32_0 = arith.constant 0 : i32
    return %arg0, %c0_i32 : i32, i32
  }
  func.func @transform_1(%arg0: i32) -> (i32, i32) {
    %c0_i32 = arith.constant 0 : i32
    %c0_i32_0 = arith.constant 0 : i32
    %c0_i32_1 = arith.constant 0 : i32
    return %c0_i32, %c0_i32_0 : i32, i32
  }
  func.func @transform_2(%arg0: i32) -> (i32, i32) {
    %c0_i32 = arith.constant 0 : i32
    %c0_i32_0 = arith.constant 0 : i32
    %c0_i32_1 = arith.constant 0 : i32
    return %c0_i32, %c0_i32_0 : i32, i32
  }
  func.func @transform_3(%arg0: i32) -> (i32, i32) {
    %c0_i32 = arith.constant 0 : i32
    %c0_i32_0 = arith.constant 0 : i32
    return %arg0, %c0_i32 : i32, i32
  }
}

module attributes {stable_mosaic.version = 11 : i64} {
  func.func @maxpool4_kernel(%arg0: i32, %arg1: memref<4x16x50xf32, #tpu.memory_space<vmem>>, %arg2: memref<16x50xf32, #tpu.memory_space<vmem>>) attributes {dimension_semantics = [#tpu.dimension_semantics<parallel>], iteration_bounds = array<i64: 4>, scalar_prefetch = 0 : i64, scratch_operands = 0 : i64, tpu.core_type = #tpu.core_type<tc>, window_params = [{transform_indices = @transform_0, window_bounds = array<i64: 4, 16, 50>}, {transform_indices = @transform_1, window_bounds = array<i64: 16, 50>}]} {
    %c0 = arith.constant 0 : index
    %c0_0 = arith.constant 0 : index
    %c0_1 = arith.constant 0 : index
    %0 = vector.load %arg1[%c0, %c0_0, %c0_1] : memref<4x16x50xf32, #tpu.memory_space<vmem>>, vector<1x16x50xf32>
    %1 = vector.shape_cast %0 : vector<1x16x50xf32> to vector<16x50xf32>
    %c1 = arith.constant 1 : index
    %c0_2 = arith.constant 0 : index
    %c0_3 = arith.constant 0 : index
    %2 = vector.load %arg1[%c1, %c0_2, %c0_3] : memref<4x16x50xf32, #tpu.memory_space<vmem>>, vector<1x16x50xf32>
    %3 = vector.shape_cast %2 : vector<1x16x50xf32> to vector<16x50xf32>
    %4 = arith.maximumf %1, %3 : vector<16x50xf32>
    %c2 = arith.constant 2 : index
    %c0_4 = arith.constant 0 : index
    %c0_5 = arith.constant 0 : index
    %5 = vector.load %arg1[%c2, %c0_4, %c0_5] : memref<4x16x50xf32, #tpu.memory_space<vmem>>, vector<1x16x50xf32>
    %6 = vector.shape_cast %5 : vector<1x16x50xf32> to vector<16x50xf32>
    %c3 = arith.constant 3 : index
    %c0_6 = arith.constant 0 : index
    %c0_7 = arith.constant 0 : index
    %7 = vector.load %arg1[%c3, %c0_6, %c0_7] : memref<4x16x50xf32, #tpu.memory_space<vmem>>, vector<1x16x50xf32>
    %8 = vector.shape_cast %7 : vector<1x16x50xf32> to vector<16x50xf32>
    %9 = arith.maximumf %6, %8 : vector<16x50xf32>
    %10 = arith.maximumf %4, %9 : vector<16x50xf32>
    %c0_8 = arith.constant 0 : index
    %c0_9 = arith.constant 0 : index
    %11 = vector.load %arg2[%c0_8, %c0_9] : memref<16x50xf32, #tpu.memory_space<vmem>>, vector<16x50xf32>
    tpu.vector_store %arg2[%c0_8, %c0_9], %10 {strides = array<i32>} : memref<16x50xf32, #tpu.memory_space<vmem>>, vector<16x50xf32>,
    return
  }
  func.func @transform_0(%arg0: i32) -> (i32, i32, i32) {
    %c0_i32 = arith.constant 0 : i32
    %c0_i32_0 = arith.constant 0 : i32
    %c0_i32_1 = arith.constant 0 : i32
    return %c0_i32, %arg0, %c0_i32_0 : i32, i32, i32
  }
  func.func @transform_1(%arg0: i32) -> (i32, i32) {
    %c0_i32 = arith.constant 0 : i32
    %c0_i32_0 = arith.constant 0 : i32
    return %arg0, %c0_i32 : i32, i32
  }
}

module attributes {stable_mosaic.version = 11 : i64} {
  func.func @mlp_head_kernel(%arg0: i32, %arg1: memref<4x800xbf16, #tpu.memory_space<vmem>>, %arg2: memref<800x512xbf16, #tpu.memory_space<vmem>>, %arg3: memref<1x512xf32, #tpu.memory_space<vmem>>, %arg4: memref<512x128xbf16, #tpu.memory_space<vmem>>, %arg5: memref<1x128xf32, #tpu.memory_space<vmem>>, %arg6: memref<4x128xf32, #tpu.memory_space<vmem>>) attributes {dimension_semantics = [#tpu.dimension_semantics<parallel>], iteration_bounds = array<i64: 1>, scalar_prefetch = 0 : i64, scratch_operands = 0 : i64, tpu.core_type = #tpu.core_type<tc>, window_params = [{transform_indices = @transform_0, window_bounds = array<i64: 4, 800>}, {pipeline_mode = #tpu.pipeline_mode<synchronous>, transform_indices = @transform_1, window_bounds = array<i64: 800, 512>}, {pipeline_mode = #tpu.pipeline_mode<synchronous>, transform_indices = @transform_2, window_bounds = array<i64: 1, 512>}, {pipeline_mode = #tpu.pipeline_mode<synchronous>, transform_indices = @transform_3, window_bounds = array<i64: 512, 128>}, {pipeline_mode = #tpu.pipeline_mode<synchronous>, transform_indices = @transform_4, window_bounds = array<i64: 1, 128>}, {transform_indices = @transform_5, window_bounds = array<i64: 4, 128>}]} {
    %c0 = arith.constant 0 : index
    %c0_0 = arith.constant 0 : index
    %0 = vector.load %arg1[%c0, %c0_0] : memref<4x800xbf16, #tpu.memory_space<vmem>>, vector<4x800xbf16>
    %c0_1 = arith.constant 0 : index
    %c0_2 = arith.constant 0 : index
    %1 = vector.load %arg2[%c0_1, %c0_2] : memref<800x512xbf16, #tpu.memory_space<vmem>>, vector<800x512xbf16>
    %cst = arith.constant dense<0.000000e+00> : vector<4x512xf32>
    %2 = tpu.matmul %0, %1, %cst {dimension_numbers = #tpu.dot_dimension_numbers<[1], [0], [0], [1], [0, 0, 1, 1], [], []>} : vector<4x800xbf16>, vector<800x512xbf16>, vector<4x512xf32> -> vector<4x512xf32>
    %c0_3 = arith.constant 0 : index
    %c0_4 = arith.constant 0 : index
    %3 = vector.load %arg3[%c0_3, %c0_4] : memref<1x512xf32, #tpu.memory_space<vmem>>, vector<1x512xf32>
    %4 = vector.broadcast %3 : vector<1x512xf32> to vector<4x512xf32>
    %5 = arith.addf %2, %4 : vector<4x512xf32>
    %cst_5 = arith.constant 0.000000e+00 : f32
    %6 = vector.broadcast %cst_5 : f32 to vector<4x512xf32>
    %7 = arith.maximumf %5, %6 : vector<4x512xf32>
    %8 = arith.truncf %7 : vector<4x512xf32> to vector<4x512xbf16>
    %c0_6 = arith.constant 0 : index
    %c0_7 = arith.constant 0 : index
    %9 = vector.load %arg4[%c0_6, %c0_7] : memref<512x128xbf16, #tpu.memory_space<vmem>>, vector<512x128xbf16>
    %cst_8 = arith.constant dense<0.000000e+00> : vector<4x128xf32>
    %10 = tpu.matmul %8, %9, %cst_8 {dimension_numbers = #tpu.dot_dimension_numbers<[1], [0], [0], [1], [0, 0, 1, 1], [], []>} : vector<4x512xbf16>, vector<512x128xbf16>, vector<4x128xf32> -> vector<4x128xf32>
    %c0_9 = arith.constant 0 : index
    %c0_10 = arith.constant 0 : index
    %11 = vector.load %arg5[%c0_9, %c0_10] : memref<1x128xf32, #tpu.memory_space<vmem>>, vector<1x128xf32>
    %12 = vector.broadcast %11 : vector<1x128xf32> to vector<4x128xf32>
    %13 = arith.addf %10, %12 : vector<4x128xf32>
    %c0_11 = arith.constant 0 : index
    %c0_12 = arith.constant 0 : index
    %14 = vector.load %arg6[%c0_11, %c0_12] : memref<4x128xf32, #tpu.memory_space<vmem>>, vector<4x128xf32>
    tpu.vector_store %arg6[%c0_11, %c0_12], %13 {strides = array<i32>} : memref<4x128xf32, #tpu.memory_space<vmem>>, vector<4x128xf32>,
    return
  }
  func.func @transform_0(%arg0: i32) -> (i32, i32) {
    %c0_i32 = arith.constant 0 : i32
    %c0_i32_0 = arith.constant 0 : i32
    return %arg0, %c0_i32 : i32, i32
  }
  func.func @transform_1(%arg0: i32) -> (i32, i32) {
    %c0_i32 = arith.constant 0 : i32
    %c0_i32_0 = arith.constant 0 : i32
    %c0_i32_1 = arith.constant 0 : i32
    return %c0_i32, %c0_i32_0 : i32, i32
  }
  func.func @transform_2(%arg0: i32) -> (i32, i32) {
    %c0_i32 = arith.constant 0 : i32
    %c0_i32_0 = arith.constant 0 : i32
    %c0_i32_1 = arith.constant 0 : i32
    return %c0_i32, %c0_i32_0 : i32, i32
  }
  func.func @transform_3(%arg0: i32) -> (i32, i32) {
    %c0_i32 = arith.constant 0 : i32
    %c0_i32_0 = arith.constant 0 : i32
    %c0_i32_1 = arith.constant 0 : i32
    return %c0_i32, %c0_i32_0 : i32, i32
  }
  func.func @transform_4(%arg0: i32) -> (i32, i32) {
    %c0_i32 = arith.constant 0 : i32
    %c0_i32_0 = arith.constant 0 : i32
    %c0_i32_1 = arith.constant 0 : i32
    return %c0_i32, %c0_i32_0 : i32, i32
  }
  func.func @transform_5(%arg0: i32) -> (i32, i32) {
    %c0_i32 = arith.constant 0 : i32
    %c0_i32_0 = arith.constant 0 : i32
    return %arg0, %c0_i32 : i32, i32
  }
}

</mosaic_0001>

<bundles_post_ra>
// kernel: lenet_forward.5
= control target key start
LH: loop header
LB: loop body
LE: loop exit
PB: predicated region body
PF: predicated region fallthrough
CT: control target
= control target key end

     0   :  { %s1293_s12 = smov 0   ;;  %s1617_s0 = inlined_call_operand.vmem [shape: bf16[2304,25], index: 0, kind: input, shape index: {}]   ;;  %s1618_s1 = inlined_call_operand.vmem [shape: bf16[25,20], index: 1, kind: input, shape index: {}]   ;;  %s1619_s2 = inlined_call_operand.vmem [shape: f32[1,20], index: 2, kind: input, shape index: {}]   ;;  %s1620_s3 = inlined_call_operand.vmem [shape: f32[2304,20], index: 3, kind: output, shape index: {}]  }
   0x1 LB: > { %s1015_s13 = sadd.s32 4294967295, %s1270_s12   ;;  %p1019_p0 = scmp.ge.s32.totalorder %s1270_s12, 1  ;;  %s1270_s12 = sphi %s1293_s12, %s13_s12  }
   0x2   : > { %p138_p1 = scmp.lt.s32.totalorder %s1270_s12, 5 }
   0x4   : > { %p139_p2 = pnand %p1019_p0, %p138_p1 }
   0x5   : > { %v1226_v0 = vld [vmem:[%s1618_s1] sm:$0xff] (!%p139_p2)   ;;  %vm558_vm0 = vcmask (!%p139_p2), 1043456   ;;  %v1227_v1 = vld [vmem:[%s1618_s1 + $0x8] sm:$0x1f] (!%p139_p2)   ;;  %vm559_vm1 = vcmask (!%p139_p2), 1044480   ;;  %s162_s18 = smul.u32 (!%p139_p2), 72, %s1015_s13 }
   0x6   : > { %142 = sbr.rel (%p139_p2) target bundleno = 300 (0x12c), region = 32  ;;  %1137 = vmatprep.subr.bf16.mxu0 (!%p139_p2), %v1226_v0  ;;  %1213 = vmatprep.subr.bf16.mxu1 (!%p139_p2), %v1226_v0  ;;  %v1272_v2 = vmov (!%p139_p2), 65535   ;;  %vm449_vm2 = vcmask (!%p139_p2), 203776   ;;  %v1391_v42 = vld [vmem:[%s1619_s2] ss:$0 sm:$0xff] (!%p139_p2)  ;;  %vm886_vm3 = vcmask (!%p139_p2), 162816  }
   0x7   : > { %1138 = vmatpush3.bf16.msra.mxu0 (!%p139_p2), %v1226_v0  ;;  %1215 = vmatpush3.bf16.msra.mxu1 (!%p139_p2), %v1226_v0  ;;  %v560_v3 = vsel (!%p139_p2), %vm558_vm0, 4294967295, %v1272_v2  ;;  %p163_p3 = scmp.lt.s32.totalorder (!%p139_p2), %s162_s18, 287 }
   0x8   : > { %v561_v4 = vsel (!%p139_p2), %vm559_vm1, %v560_v3, 0 }
   0x9   : > { %v563_v5 = vand.u32 (!%p139_p2), %v1227_v1, %v561_v4 }
   0xb   : > { %1139 = vmatprep.subr.bf16.mxu0 (!%p139_p2), %v563_v5  ;;  %1214 = vmatprep.subr.bf16.mxu1 (!%p139_p2), %v563_v5 }
   0xc   : > { %1140 = vmatpush3.bf16.msra.mxu0 (!%p139_p2), %v563_v5  ;;  %1216 = vmatpush3.bf16.msra.mxu1 (!%p139_p2), %v563_v5 }
   0xd   : > { %s1622_s18 = smov (!%p163_p3, %s162_s18), 287 }
   0xe   : > { %s1020_s19 = sshll.u32 %s1622_s18, 2  ;;  %s1021_s23 = sshll.u32 %s1622_s18, 3 }
   0xf   : > { %s1313_s22 = scalar_lea.vmem %s1617_s0, %s1020_s19  ;;  %s1396_s28 = scalar_lea.vmem %s1620_s3, %s1021_s23 }
  0x10   : > { %v1228_v6 = vld [vmem:[%s1313_s22] sm:$0xff]   ;;  %v1229_v7 = vld [vmem:[%s1313_s22 + $0x90] sm:$0xff]   ;;  %v1230_v8 = vld [vmem:[%s1313_s22 + $0x8] sm:$0xff]  }
  0x11   : > { %1141 = vmatprep.mubr.msk.bf16.mxu0 %vm449_vm2, %v1228_v6  ;;  %1177 = vmatprep.mubr.msk.bf16.mxu1 %vm449_vm2, %v1229_v7  ;;  %v1231_v9 = vld [vmem:[%s1313_s22 + $0x98] sm:$0xff]   ;;  %v1232_v10 = vld [vmem:[%s1313_s22 + $0x10] sm:$0xff]   ;;  %v1233_v11 = vld [vmem:[%s1313_s22 + $0xa0] sm:$0xff]  }
  0x12   : > { %1142 = vmatmul.mubr.msk.bf16.vlgmr.msra.gmra.mrb[0].mxu0 %vm449_vm2, %v1230_v8  ;;  %1178 = vmatmul.mubr.msk.bf16.vlgmr.msra.gmra.mrb[0].mxu1 %vm449_vm2, %v1231_v9  ;;  %v1234_v12 = vld [vmem:[%s1313_s22 + $0x18] sm:$0xff]   ;;  %v1235_v13 = vld [vmem:[%s1313_s22 + $0xa8] sm:$0xff]   ;;  %v1236_v14 = vld [vmem:[%s1313_s22 + $0x20] sm:$0xff]  }
  0x13   : > { %1145 = vmatprep.mubr.msk.bf16.mxu0 %vm449_vm2, %v1232_v10  ;;  %1181 = vmatprep.mubr.msk.bf16.mxu1 %vm449_vm2, %v1233_v11  ;;  %v1237_v15 = vld [vmem:[%s1313_s22 + $0xb0] sm:$0xff]   ;;  %v1238_v16 = vld [vmem:[%s1313_s22 + $0x28] sm:$0xff]   ;;  %v1239_v17 = vld [vmem:[%s1313_s22 + $0xb8] sm:$0xff]  }
  0x14   : > { %v1240_v18 = vld [vmem:[%s1313_s22 + $0x30] sm:$0xff]   ;;  %v1241_v19 = vld [vmem:[%s1313_s22 + $0xc0] sm:$0xff]   ;;  %v1242_v20 = vld [vmem:[%s1313_s22 + $0x38] sm:$0xff]  }
  0x15   : > { %v1243_v21 = vld [vmem:[%s1313_s22 + $0xc8] sm:$0xff]   ;;  %v1244_v22 = vld [vmem:[%s1313_s22 + $0x40] sm:$0xff]   ;;  %v1245_v23 = vld [vmem:[%s1313_s22 + $0xd0] sm:$0xff]  }
  0x16   : > { %v1246_v24 = vld [vmem:[%s1313_s22 + $0x48] sm:$0xff]   ;;  %v1247_v25 = vld [vmem:[%s1313_s22 + $0xd8] sm:$0xff]   ;;  %v1248_v26 = vld [vmem:[%s1313_s22 + $0x50] sm:$0xff]  }
  0x17   : > { %v1249_v27 = vld [vmem:[%s1313_s22 + $0xe0] sm:$0xff]   ;;  %v1250_v28 = vld [vmem:[%s1313_s22 + $0x58] sm:$0xff]   ;;  %v1251_v29 = vld [vmem:[%s1313_s22 + $0xe8] sm:$0xff]  }
  0x18   : > { %v1252_v30 = vld [vmem:[%s1313_s22 + $0x60] sm:$0xff]   ;;  %v1253_v31 = vld [vmem:[%s1313_s22 + $0xf0] sm:$0xff]   ;;  %v1254_v32 = vld [vmem:[%s1313_s22 + $0x68] sm:$0xff]  }
  0x19   : > { %v1255_v33 = vld [vmem:[%s1313_s22 + $0xf8] sm:$0xff]   ;;  %v1256_v34 = vld [vmem:[%s1313_s22 + $0x70] sm:$0xff]   ;;  %v1257_v35 = vld [vmem:[%s1313_s22 + $0x100] sm:$0xff]  }
  0x1a   : > { %1146 = vmatmul.mubr.msk.bf16.gmra.mrb[4].mxu0 %vm449_vm2, %v1234_v12  ;;  %1182 = vmatmul.mubr.msk.bf16.gmra.mrb[4].mxu1 %vm449_vm2, %v1235_v13  ;;  %v1258_v36 = vld [vmem:[%s1313_s22 + $0x78] sm:$0xff]   ;;  %v1259_v37 = vld [vmem:[%s1313_s22 + $0x108] sm:$0xff]   ;;  %v1260_v38 = vld [vmem:[%s1313_s22 + $0x80] sm:$0xff]  }
  0x1b   : > { %1149 = vmatprep.mubr.msk.bf16.mxu0 %vm449_vm2, %v1236_v14  ;;  %1185 = vmatprep.mubr.msk.bf16.mxu1 %vm449_vm2, %v1237_v15  ;;  %v1261_v39 = vld [vmem:[%s1313_s22 + $0x110] sm:$0xff]   ;;  %v1262_v40 = vld [vmem:[%s1313_s22 + $0x88] sm:$0xff]   ;;  %v1263_v41 = vld [vmem:[%s1313_s22 + $0x118] sm:$0xff]  }
  0x22   : > { %1150 = vmatmul.mubr.msk.bf16.gmra.mrb[8].mxu0 %vm449_vm2, %v1238_v16  ;;  %1186 = vmatmul.mubr.msk.bf16.gmra.mrb[8].mxu1 %vm449_vm2, %v1239_v17 }
  0x23   : > { %1153 = vmatprep.mubr.msk.bf16.mxu0 %vm449_vm2, %v1240_v18  ;;  %1189 = vmatprep.mubr.msk.bf16.mxu1 %vm449_vm2, %v1241_v19 }
  0x2a   : > { %1154 = vmatmul.mubr.msk.bf16.gmra.mrb[12].mxu0 %vm449_vm2, %v1242_v20  ;;  %1190 = vmatmul.mubr.msk.bf16.gmra.mrb[12].mxu1 %vm449_vm2, %v1243_v21 }
  0x2b   : > { %1157 = vmatprep.mubr.msk.bf16.mxu0 %vm449_vm2, %v1244_v22  ;;  %1193 = vmatprep.mubr.msk.bf16.mxu1 %vm449_vm2, %v1245_v23 }
  0x32   : > { %1158 = vmatmul.mubr.msk.bf16.gmra.mrb[16].mxu0 %vm449_vm2, %v1246_v24  ;;  %1194 = vmatmul.mubr.msk.bf16.gmra.mrb[16].mxu1 %vm449_vm2, %v1247_v25 }
  0x33   : > { %1161 = vmatprep.mubr.msk.bf16.mxu0 %vm449_vm2, %v1248_v26  ;;  %1197 = vmatprep.mubr.msk.bf16.mxu1 %vm449_vm2, %v1249_v27 }
  0x3a   : > { %1162 = vmatmul.mubr.msk.bf16.gmra.mrb[20].mxu0 %vm449_vm2, %v1250_v28  ;;  %1198 = vmatmul.mubr.msk.bf16.gmra.mrb[20].mxu1 %vm449_vm2, %v1251_v29 }
  0x3b   : > { %1165 = vmatprep.mubr.msk.bf16.mxu0 %vm449_vm2, %v1252_v30  ;;  %1201 = vmatprep.mubr.msk.bf16.mxu1 %vm449_vm2, %v1253_v31 }
  0x42   : > { %1166 = vmatmul.mubr.msk.bf16.gmra.mrb[24].mxu0 %vm449_vm2, %v1254_v32  ;;  %1202 = vmatmul.mubr.msk.bf16.gmra.mrb[24].mxu1 %vm449_vm2, %v1255_v33 }
  0x43   : > { %1169 = vmatprep.mubr.msk.bf16.mxu0 %vm449_vm2, %v1256_v34  ;;  %1205 = vmatprep.mubr.msk.bf16.mxu1 %vm449_vm2, %v1257_v35 }
  0x4a   : > { %1170 = vmatmul.mubr.msk.bf16.gmra.mrb[28].mxu0 %vm449_vm2, %v1258_v36  ;;  %1206 = vmatmul.mubr.msk.bf16.gmra.mrb[28].mxu1 %vm449_vm2, %v1259_v37 }
  0x4b   : > { %1173 = vmatprep.mubr.msk.bf16.mxu0 %vm449_vm2, %v1260_v38  ;;  %1209 = vmatprep.mubr.msk.bf16.mxu1 %vm449_vm2, %v1261_v39 }
  0x52   : > { %1174 = vmatmul.mubr.msk.bf16.gmra.mrb[32].mxu0 %vm449_vm2, %v1262_v40  ;;  %1210 = vmatmul.mubr.msk.bf16.gmra.mrb[32].mxu1 %vm449_vm2, %v1263_v41 }
  0xe5   : > { %v1143_v43 = vpop.f32.mrb[0].mxu0  ;;  %v1179_v45 = vpop.f32.mrb[0].mxu1 }
  0xe6   : > { %v608_v44 = vadd.f32 %v1143_v43, %v1391_v42  ;;  %v599_v46 = vpop.f32.mrb[1].mxu0  ;;  %v752_v47 = vadd.f32 %v1179_v45, %v1391_v42  ;;  %v743_v49 = vpop.f32.mrb[1].mxu1 }
  0xe7   : > { %v600_v48 = vadd.f32 %v1391_v42, %v599_v46  ;;  %v1144_v50 = vpop.f32.mrb[2].mxu0  ;;  %v744_v51 = vadd.f32 %v1391_v42, %v743_v49  ;;  %v1180_v53 = vpop.f32.mrb[2].mxu1 }
  0xe8   : > { %889 = vst.msk [vmem:[%s1396_s28 + $0x10] sm:$0xff] %vm886_vm3, %v608_v44  ;;  %v611_v52 = vadd.f32 %v1144_v50, %v1391_v42  ;;  %v602_v54 = vpop.f32.mrb[3].mxu0  ;;  %925 = vst.msk [vmem:[%s1396_s28 + $0x130] sm:$0xff] %vm886_vm3, %v752_v47  ;;  %v755_v55 = vadd.f32 %v1180_v53, %v1391_v42  ;;  %v746_v57 = vpop.f32.mrb[3].mxu1 }
  0xe9   : > { %887 = vst.msk [vmem:[%s1396_s28] sm:$0xff] %vm886_vm3, %v600_v48  ;;  %v603_v56 = vadd.f32 %v1391_v42, %v602_v54  ;;  %923 = vst.msk [vmem:[%s1396_s28 + $0x120] sm:$0xff] %vm886_vm3, %v744_v51  ;;  %v747_v58 = vadd.f32 %v1391_v42, %v746_v57 }
  0xea   : > { %890 = vst.msk [vmem:[%s1396_s28 + $0x18] sm:$0xff] %vm886_vm3, %v611_v52  ;;  %926 = vst.msk [vmem:[%s1396_s28 + $0x138] sm:$0xff] %vm886_vm3, %v755_v55 }
  0xeb   : > { %888 = vst.msk [vmem:[%s1396_s28 + $0x8] sm:$0xff] %vm886_vm3, %v603_v56  ;;  %924 = vst.msk [vmem:[%s1396_s28 + $0x128] sm:$0xff] %vm886_vm3, %v747_v58 }
  0xed   : > { %v1147_v59 = vpop.f32.mrb[4].mxu0  ;;  %v1183_v61 = vpop.f32.mrb[4].mxu1 }
  0xee   : > { %v624_v60 = vadd.f32 %v1147_v59, %v1391_v42  ;;  %v615_v62 = vpop.f32.mrb[5].mxu0  ;;  %v768_v63 = vadd.f32 %v1183_v61, %v1391_v42  ;;  %v759_v1 = vpop.f32.mrb[5].mxu1 }
  0xef   : > { %v616_v0 = vadd.f32 %v1391_v42, %v615_v62  ;;  %v1148_v2 = vpop.f32.mrb[6].mxu0  ;;  %v760_v3 = vadd.f32 %v1391_v42, %v759_v1  ;;  %v1184_v5 = vpop.f32.mrb[6].mxu1 }
  0xf0   : > { %893 = vst.msk [vmem:[%s1396_s28 + $0x30] sm:$0xff] %vm886_vm3, %v624_v60  ;;  %v627_v4 = vadd.f32 %v1148_v2, %v1391_v42  ;;  %v618_v6 = vpop.f32.mrb[7].mxu0  ;;  %929 = vst.msk [vmem:[%s1396_s28 + $0x150] sm:$0xff] %vm886_vm3, %v768_v63  ;;  %v771_v7 = vadd.f32 %v1184_v5, %v1391_v42  ;;  %v762_v9 = vpop.f32.mrb[7].mxu1 }
  0xf1   : > { %891 = vst.msk [vmem:[%s1396_s28 + $0x20] sm:$0xff] %vm886_vm3, %v616_v0  ;;  %v619_v8 = vadd.f32 %v1391_v42, %v618_v6  ;;  %927 = vst.msk [vmem:[%s1396_s28 + $0x140] sm:$0xff] %vm886_vm3, %v760_v3  ;;  %v763_v10 = vadd.f32 %v1391_v42, %v762_v9 }
  0xf2   : > { %894 = vst.msk [vmem:[%s1396_s28 + $0x38] sm:$0xff] %vm886_vm3, %v627_v4  ;;  %930 = vst.msk [vmem:[%s1396_s28 + $0x158] sm:$0xff] %vm886_vm3, %v771_v7 }
  0xf3   : > { %892 = vst.msk [vmem:[%s1396_s28 + $0x28] sm:$0xff] %vm886_vm3, %v619_v8  ;;  %928 = vst.msk [vmem:[%s1396_s28 + $0x148] sm:$0xff] %vm886_vm3, %v763_v10 }
  0xf5   : > { %v1151_v11 = vpop.f32.mrb[8].mxu0  ;;  %v1187_v13 = vpop.f32.mrb[8].mxu1 }
  0xf6   : > { %v640_v12 = vadd.f32 %v1151_v11, %v1391_v42  ;;  %v631_v14 = vpop.f32.mrb[9].mxu0  ;;  %v784_v15 = vadd.f32 %v1187_v13, %v1391_v42  ;;  %v775_v17 = vpop.f32.mrb[9].mxu1 }
  0xf7   : > { %v632_v16 = vadd.f32 %v1391_v42, %v631_v14  ;;  %v1152_v18 = vpop.f32.mrb[10].mxu0  ;;  %v776_v19 = vadd.f32 %v1391_v42, %v775_v17  ;;  %v1188_v21 = vpop.f32.mrb[10].mxu1 }
  0xf8   : > { %897 = vst.msk [vmem:[%s1396_s28 + $0x50] sm:$0xff] %vm886_vm3, %v640_v12  ;;  %v643_v20 = vadd.f32 %v1152_v18, %v1391_v42  ;;  %v634_v22 = vpop.f32.mrb[11].mxu0  ;;  %933 = vst.msk [vmem:[%s1396_s28 + $0x170] sm:$0xff] %vm886_vm3, %v784_v15  ;;  %v787_v23 = vadd.f32 %v1188_v21, %v1391_v42  ;;  %v778_v25 = vpop.f32.mrb[11].mxu1 }
  0xf9   : > { %895 = vst.msk [vmem:[%s1396_s28 + $0x40] sm:$0xff] %vm886_vm3, %v632_v16  ;;  %v635_v24 = vadd.f32 %v1391_v42, %v634_v22  ;;  %931 = vst.msk [vmem:[%s1396_s28 + $0x160] sm:$0xff] %vm886_vm3, %v776_v19  ;;  %v779_v26 = vadd.f32 %v1391_v42, %v778_v25 }
  0xfa   : > { %898 = vst.msk [vmem:[%s1396_s28 + $0x58] sm:$0xff] %vm886_vm3, %v643_v20  ;;  %934 = vst.msk [vmem:[%s1396_s28 + $0x178] sm:$0xff] %vm886_vm3, %v787_v23 }
  0xfb   : > { %896 = vst.msk [vmem:[%s1396_s28 + $0x48] sm:$0xff] %vm886_vm3, %v635_v24  ;;  %932 = vst.msk [vmem:[%s1396_s28 + $0x168] sm:$0xff] %vm886_vm3, %v779_v26 }
  0xfd   : > { %v1155_v27 = vpop.f32.mrb[12].mxu0  ;;  %v1191_v29 = vpop.f32.mrb[12].mxu1 }
  0xfe   : > { %v656_v28 = vadd.f32 %v1155_v27, %v1391_v42  ;;  %v647_v30 = vpop.f32.mrb[13].mxu0  ;;  %v800_v31 = vadd.f32 %v1191_v29, %v1391_v42  ;;  %v791_v33 = vpop.f32.mrb[13].mxu1 }
  0xff   : > { %v648_v32 = vadd.f32 %v1391_v42, %v647_v30  ;;  %v1156_v34 = vpop.f32.mrb[14].mxu0  ;;  %v792_v35 = vadd.f32 %v1391_v42, %v791_v33  ;;  %v1192_v37 = vpop.f32.mrb[14].mxu1 }
 0x100   : > { %901 = vst.msk [vmem:[%s1396_s28 + $0x70] sm:$0xff] %vm886_vm3, %v656_v28  ;;  %v659_v36 = vadd.f32 %v1156_v34, %v1391_v42  ;;  %v650_v38 = vpop.f32.mrb[15].mxu0  ;;  %937 = vst.msk [vmem:[%s1396_s28 + $0x190] sm:$0xff] %vm886_vm3, %v800_v31  ;;  %v803_v39 = vadd.f32 %v1192_v37, %v1391_v42  ;;  %v794_v41 = vpop.f32.mrb[15].mxu1 }
 0x101   : > { %899 = vst.msk [vmem:[%s1396_s28 + $0x60] sm:$0xff] %vm886_vm3, %v648_v32  ;;  %v651_v40 = vadd.f32 %v1391_v42, %v650_v38  ;;  %935 = vst.msk [vmem:[%s1396_s28 + $0x180] sm:$0xff] %vm886_vm3, %v792_v35  ;;  %v795_v43 = vadd.f32 %v1391_v42, %v794_v41 }
 0x102   : > { %902 = vst.msk [vmem:[%s1396_s28 + $0x78] sm:$0xff] %vm886_vm3, %v659_v36  ;;  %938 = vst.msk [vmem:[%s1396_s28 + $0x198] sm:$0xff] %vm886_vm3, %v803_v39 }
 0x103   : > { %900 = vst.msk [vmem:[%s1396_s28 + $0x68] sm:$0xff] %vm886_vm3, %v651_v40  ;;  %936 = vst.msk [vmem:[%s1396_s28 + $0x188] sm:$0xff] %vm886_vm3, %v795_v43 }
 0x105   : > { %v1159_v44 = vpop.f32.mrb[16].mxu0  ;;  %v1195_v46 = vpop.f32.mrb[16].mxu1 }
 0x106   : > { %v672_v45 = vadd.f32 %v1159_v44, %v1391_v42  ;;  %v663_v47 = vpop.f32.mrb[17].mxu0  ;;  %v816_v48 = vadd.f32 %v1195_v46, %v1391_v42  ;;  %v807_v50 = vpop.f32.mrb[17].mxu1 }
 0x107   : > { %v664_v49 = vadd.f32 %v1391_v42, %v663_v47  ;;  %v1160_v51 = vpop.f32.mrb[18].mxu0  ;;  %v808_v52 = vadd.f32 %v1391_v42, %v807_v50  ;;  %v1196_v54 = vpop.f32.mrb[18].mxu1 }
 0x108   : > { %905 = vst.msk [vmem:[%s1396_s28 + $0x90] sm:$0xff] %vm886_vm3, %v672_v45  ;;  %v675_v53 = vadd.f32 %v1160_v51, %v1391_v42  ;;  %v666_v55 = vpop.f32.mrb[19].mxu0  ;;  %941 = vst.msk [vmem:[%s1396_s28 + $0x1b0] sm:$0xff] %vm886_vm3, %v816_v48  ;;  %v819_v56 = vadd.f32 %v1196_v54, %v1391_v42  ;;  %v810_v58 = vpop.f32.mrb[19].mxu1 }
 0x109   : > { %903 = vst.msk [vmem:[%s1396_s28 + $0x80] sm:$0xff] %vm886_vm3, %v664_v49  ;;  %v667_v57 = vadd.f32 %v1391_v42, %v666_v55  ;;  %939 = vst.msk [vmem:[%s1396_s28 + $0x1a0] sm:$0xff] %vm886_vm3, %v808_v52  ;;  %v811_v59 = vadd.f32 %v1391_v42, %v810_v58 }
 0x10a   : > { %906 = vst.msk [vmem:[%s1396_s28 + $0x98] sm:$0xff] %vm886_vm3, %v675_v53  ;;  %942 = vst.msk [vmem:[%s1396_s28 + $0x1b8] sm:$0xff] %vm886_vm3, %v819_v56 }
 0x10b   : > { %904 = vst.msk [vmem:[%s1396_s28 + $0x88] sm:$0xff] %vm886_vm3, %v667_v57  ;;  %940 = vst.msk [vmem:[%s1396_s28 + $0x1a8] sm:$0xff] %vm886_vm3, %v811_v59 }
 0x10d   : > { %v1163_v60 = vpop.f32.mrb[20].mxu0  ;;  %v1199_v62 = vpop.f32.mrb[20].mxu1 }
 0x10e   : > { %v688_v61 = vadd.f32 %v1163_v60, %v1391_v42  ;;  %v679_v63 = vpop.f32.mrb[21].mxu0  ;;  %v832_v0 = vadd.f32 %v1199_v62, %v1391_v42  ;;  %v823_v2 = vpop.f32.mrb[21].mxu1 }
 0x10f   : > { %v680_v1 = vadd.f32 %v1391_v42, %v679_v63  ;;  %v1164_v3 = vpop.f32.mrb[22].mxu0  ;;  %v824_v4 = vadd.f32 %v1391_v42, %v823_v2  ;;  %v1200_v6 = vpop.f32.mrb[22].mxu1 }
 0x110   : > { %909 = vst.msk [vmem:[%s1396_s28 + $0xb0] sm:$0xff] %vm886_vm3, %v688_v61  ;;  %v691_v5 = vadd.f32 %v1164_v3, %v1391_v42  ;;  %v682_v7 = vpop.f32.mrb[23].mxu0  ;;  %945 = vst.msk [vmem:[%s1396_s28 + $0x1d0] sm:$0xff] %vm886_vm3, %v832_v0  ;;  %v835_v8 = vadd.f32 %v1200_v6, %v1391_v42  ;;  %v826_v10 = vpop.f32.mrb[23].mxu1 }
 0x111   : > { %907 = vst.msk [vmem:[%s1396_s28 + $0xa0] sm:$0xff] %vm886_vm3, %v680_v1  ;;  %v683_v9 = vadd.f32 %v1391_v42, %v682_v7  ;;  %943 = vst.msk [vmem:[%s1396_s28 + $0x1c0] sm:$0xff] %vm886_vm3, %v824_v4  ;;  %v827_v11 = vadd.f32 %v1391_v42, %v826_v10 }
 0x112   : > { %910 = vst.msk [vmem:[%s1396_s28 + $0xb8] sm:$0xff] %vm886_vm3, %v691_v5  ;;  %946 = vst.msk [vmem:[%s1396_s28 + $0x1d8] sm:$0xff] %vm886_vm3, %v835_v8 }
 0x113   : > { %908 = vst.msk [vmem:[%s1396_s28 + $0xa8] sm:$0xff] %vm886_vm3, %v683_v9  ;;  %944 = vst.msk [vmem:[%s1396_s28 + $0x1c8] sm:$0xff] %vm886_vm3, %v827_v11 }
 0x115   : > { %v1167_v12 = vpop.f32.mrb[24].mxu0  ;;  %v1203_v14 = vpop.f32.mrb[24].mxu1 }
 0x116   : > { %v704_v13 = vadd.f32 %v1167_v12, %v1391_v42  ;;  %v695_v15 = vpop.f32.mrb[25].mxu0  ;;  %v848_v16 = vadd.f32 %v1203_v14, %v1391_v42  ;;  %v839_v18 = vpop.f32.mrb[25].mxu1 }
 0x117   : > { %v696_v17 = vadd.f32 %v1391_v42, %v695_v15  ;;  %v1168_v19 = vpop.f32.mrb[26].mxu0  ;;  %v840_v20 = vadd.f32 %v1391_v42, %v839_v18  ;;  %v1204_v22 = vpop.f32.mrb[26].mxu1 }
 0x118   : > { %913 = vst.msk [vmem:[%s1396_s28 + $0xd0] sm:$0xff] %vm886_vm3, %v704_v13  ;;  %v707_v21 = vadd.f32 %v1168_v19, %v1391_v42  ;;  %v698_v23 = vpop.f32.mrb[27].mxu0  ;;  %949 = vst.msk [vmem:[%s1396_s28 + $0x1f0] sm:$0xff] %vm886_vm3, %v848_v16  ;;  %v851_v24 = vadd.f32 %v1204_v22, %v1391_v42  ;;  %v842_v26 = vpop.f32.mrb[27].mxu1 }
 0x119   : > { %911 = vst.msk [vmem:[%s1396_s28 + $0xc0] sm:$0xff] %vm886_vm3, %v696_v17  ;;  %v699_v25 = vadd.f32 %v1391_v42, %v698_v23  ;;  %947 = vst.msk [vmem:[%s1396_s28 + $0x1e0] sm:$0xff] %vm886_vm3, %v840_v20  ;;  %v843_v27 = vadd.f32 %v1391_v42, %v842_v26 }
 0x11a   : > { %914 = vst.msk [vmem:[%s1396_s28 + $0xd8] sm:$0xff] %vm886_vm3, %v707_v21  ;;  %950 = vst.msk [vmem:[%s1396_s28 + $0x1f8] sm:$0xff] %vm886_vm3, %v851_v24 }
 0x11b   : > { %912 = vst.msk [vmem:[%s1396_s28 + $0xc8] sm:$0xff] %vm886_vm3, %v699_v25  ;;  %948 = vst.msk [vmem:[%s1396_s28 + $0x1e8] sm:$0xff] %vm886_vm3, %v843_v27 }
 0x11d   : > { %v1171_v28 = vpop.f32.mrb[28].mxu0  ;;  %v1207_v30 = vpop.f32.mrb[28].mxu1 }
 0x11e   : > { %v720_v29 = vadd.f32 %v1171_v28, %v1391_v42  ;;  %v711_v31 = vpop.f32.mrb[29].mxu0  ;;  %v864_v32 = vadd.f32 %v1207_v30, %v1391_v42  ;;  %v855_v34 = vpop.f32.mrb[29].mxu1 }
 0x11f   : > { %v712_v33 = vadd.f32 %v1391_v42, %v711_v31  ;;  %v1172_v35 = vpop.f32.mrb[30].mxu0  ;;  %v856_v36 = vadd.f32 %v1391_v42, %v855_v34  ;;  %v1208_v38 = vpop.f32.mrb[30].mxu1 }
 0x120   : > { %917 = vst.msk [vmem:[%s1396_s28 + $0xf0] sm:$0xff] %vm886_vm3, %v720_v29  ;;  %v723_v37 = vadd.f32 %v1172_v35, %v1391_v42  ;;  %v714_v39 = vpop.f32.mrb[31].mxu0  ;;  %953 = vst.msk [vmem:[%s1396_s28 + $0x210] sm:$0xff] %vm886_vm3, %v864_v32  ;;  %v867_v40 = vadd.f32 %v1208_v38, %v1391_v42  ;;  %v858_v43 = vpop.f32.mrb[31].mxu1 }
 0x121   : > { %915 = vst.msk [vmem:[%s1396_s28 + $0xe0] sm:$0xff] %vm886_vm3, %v712_v33  ;;  %v715_v41 = vadd.f32 %v1391_v42, %v714_v39  ;;  %951 = vst.msk [vmem:[%s1396_s28 + $0x200] sm:$0xff] %vm886_vm3, %v856_v36  ;;  %v859_v44 = vadd.f32 %v1391_v42, %v858_v43 }
 0x122   : > { %918 = vst.msk [vmem:[%s1396_s28 + $0xf8] sm:$0xff] %vm886_vm3, %v723_v37  ;;  %954 = vst.msk [vmem:[%s1396_s28 + $0x218] sm:$0xff] %vm886_vm3, %v867_v40 }
 0x123   : > { %916 = vst.msk [vmem:[%s1396_s28 + $0xe8] sm:$0xff] %vm886_vm3, %v715_v41  ;;  %952 = vst.msk [vmem:[%s1396_s28 + $0x208] sm:$0xff] %vm886_vm3, %v859_v44 }
 0x125   : > { %v1175_v45 = vpop.f32.mrb[32].mxu0  ;;  %v1211_v47 = vpop.f32.mrb[32].mxu1 }
 0x126   : > { %v736_v46 = vadd.f32 %v1175_v45, %v1391_v42  ;;  %v727_v48 = vpop.f32.mrb[33].mxu0  ;;  %v880_v49 = vadd.f32 %v1211_v47, %v1391_v42  ;;  %v871_v51 = vpop.f32.mrb[33].mxu1 }
 0x127   : > { %v728_v50 = vadd.f32 %v1391_v42, %v727_v48  ;;  %v1176_v52 = vpop.f32.mrb[34].mxu0  ;;  %v872_v53 = vadd.f32 %v1391_v42, %v871_v51  ;;  %v1212_v55 = vpop.f32.mrb[34].mxu1 }
 0x128   : > { %921 = vst.msk [vmem:[%s1396_s28 + $0x110] sm:$0xff] %vm886_vm3, %v736_v46  ;;  %v739_v54 = vadd.f32 %v1176_v52, %v1391_v42  ;;  %v730_v56 = vpop.f32.mrb[35].mxu0  ;;  %957 = vst.msk [vmem:[%s1396_s28 + $0x230] sm:$0xff] %vm886_vm3, %v880_v49  ;;  %v883_v57 = vadd.f32 %v1212_v55, %v1391_v42  ;;  %v874_v59 = vpop.f32.mrb[35].mxu1 }
 0x129   : > { %919 = vst.msk [vmem:[%s1396_s28 + $0x100] sm:$0xff] %vm886_vm3, %v728_v50  ;;  %v731_v58 = vadd.f32 %v1391_v42, %v730_v56  ;;  %955 = vst.msk [vmem:[%s1396_s28 + $0x220] sm:$0xff] %vm886_vm3, %v872_v53  ;;  %v875_v60 = vadd.f32 %v1391_v42, %v874_v59 }
 0x12a   : > { %922 = vst.msk [vmem:[%s1396_s28 + $0x118] sm:$0xff] %vm886_vm3, %v739_v54  ;;  %958 = vst.msk [vmem:[%s1396_s28 + $0x238] sm:$0xff] %vm886_vm3, %v883_v57 }
 0x12b   : > { %920 = vst.msk [vmem:[%s1396_s28 + $0x108] sm:$0xff] %vm886_vm3, %v731_v58  ;;  %956 = vst.msk [vmem:[%s1396_s28 + $0x228] sm:$0xff] %vm886_vm3, %v875_v60 }
 0x12c PF: > { %s13_s12 = sadd.s32 1, %s1270_s12  }
 0x12d   : > { %p10_p4 = scmp.ge.s32.totalorder %s13_s12, 6  }
 0x12f   :  { %12 = sbr.rel (!%p10_p4) target bundleno = 1 (0x1), region = 62 }

// kernel: lenet_forward.6
= control target key start
LH: loop header
LB: loop body
LE: loop exit
PB: predicated region body
PF: predicated region fallthrough
CT: control target
= control target key end

     0   :  { %s772_s6 = smov 0   ;;  %s774_s7 = smov 0   ;;  %s1084_s0 = inlined_call_operand.vmem [shape: f32[4,576,20], index: 0, kind: input, shape index: {}]   ;;  %s1085_s1 = inlined_call_operand.vmem [shape: f32[576,20], index: 1, kind: output, shape index: {}]  }
   0x1   :  { %s776_s8 = smov 0  }
   0x2 LB: > { %s648_s9 = sadd.s32 4294967295, %s760_s8   ;;  %s789_s10 = sadd.s32 1, %s760_s8   ;;  %s760_s8 = sphi %s776_s8, %s1088_s8   ;;  %s756_s7 = sphi %s774_s7, %s1087_s7   ;;  %s752_s6 = sphi %s772_s6, %s1086_s6  }
   0x3   : > { %s15_s11 = ssub.s32 %s760_s8, %s789_s10  ;;  %s18_s12 = sadd.s32 1, %s756_s7 }
   0x4   : > { %p16_p0 = scmp.eq.s32.totalorder %s15_s11, 0  ;;  %p25_p1 = scmp.ne.s32.totalorder %s756_s7, %s752_s6 }
   0x5   : > { %p26_p2 = scmp.eq.s32.totalorder %s760_s8, 0  ;;  %p651_p4 = scmp.ge.s32.totalorder %s760_s8, 4 }
   0x6   : > { %s798_s13 = scalar_select %p16_p0, %s756_s7, %s18_s12  }
   0x7   : > { %p27_p3 = por %p26_p2, %p25_p1  ;;  %77 = sbr.rel (%p651_p4) target bundleno = 55 (0x37), region = 16 }
   0xe   : > { %80 = sbr.rel (!%p27_p3) target bundleno = 55 (0x37), region = 20  ;;  %s82_s14 = sand.u32 (%p27_p3), 1, %s756_s7  }
   0xf   : > { %s711_s15 = smul.u32 (%p27_p3), 144, %s760_s8 }
  0x10   : > { %s712_s16 = smul.u32 (%p27_p3), 576, %s82_s14 }
  0x11   : > { %s806_s19 = scalar_lea.vmem (%p27_p3), %s1084_s0, %s711_s15 }
  0x12   : > { %v257_v0 = vld [vmem:[%s806_s19] sm:$0xff] (%p27_p3)  ;;  %v259_v1 = vld [vmem:[%s806_s19 + $0x8] sm:$0xff] (%p27_p3)  ;;  %v261_v2 = vld [vmem:[%s806_s19 + $0x10] sm:$0xff] (%p27_p3)  ;;  %s811_s20 = scalar_lea.vmem (%p27_p3), [#allocation2], %s712_s16 }
  0x13   : > { %258 = vst [vmem:[%s811_s20] sm:$0xff] (%p27_p3), %v257_v0  ;;  %260 = vst [vmem:[%s811_s20 + $0x8] sm:$0xff] (%p27_p3), %v259_v1  ;;  %v263_v3 = vld [vmem:[%s806_s19 + $0x18] sm:$0xff] (%p27_p3)  ;;  %v265_v4 = vld [vmem:[%s806_s19 + $0x20] sm:$0xff] (%p27_p3) }
  0x14   : > { %262 = vst [vmem:[%s811_s20 + $0x10] sm:$0xff] (%p27_p3), %v261_v2  ;;  %v267_v5 = vld [vmem:[%s806_s19 + $0x28] sm:$0xff] (%p27_p3)  ;;  %264 = vst [vmem:[%s811_s20 + $0x18] sm:$0xff] (%p27_p3), %v263_v3  ;;  %v269_v6 = vld [vmem:[%s806_s19 + $0x30] sm:$0xff] (%p27_p3) }
  0x15   : > { %266 = vst [vmem:[%s811_s20 + $0x20] sm:$0xff] %v265_v4  ;;  %268 = vst [vmem:[%s811_s20 + $0x28] sm:$0xff] %v267_v5  ;;  %v271_v7 = vld [vmem:[%s806_s19 + $0x38] sm:$0xff]  ;;  %v273_v8 = vld [vmem:[%s806_s19 + $0x40] sm:$0xff] }
  0x16   : > { %270 = vst [vmem:[%s811_s20 + $0x30] sm:$0xff] %v269_v6  ;;  %272 = vst [vmem:[%s811_s20 + $0x38] sm:$0xff] %v271_v7  ;;  %v275_v9 = vld [vmem:[%s806_s19 + $0x48] sm:$0xff]  ;;  %v277_v10 = vld [vmem:[%s806_s19 + $0x50] sm:$0xff] }
  0x17   : > { %274 = vst [vmem:[%s811_s20 + $0x40] sm:$0xff] %v273_v8  ;;  %v279_v11 = vld [vmem:[%s806_s19 + $0x58] sm:$0xff]  ;;  %276 = vst [vmem:[%s811_s20 + $0x48] sm:$0xff] %v275_v9  ;;  %v281_v12 = vld [vmem:[%s806_s19 + $0x60] sm:$0xff] }
  0x18   : > { %278 = vst [vmem:[%s811_s20 + $0x50] sm:$0xff] %v277_v10  ;;  %280 = vst [vmem:[%s811_s20 + $0x58] sm:$0xff] %v279_v11  ;;  %v283_v13 = vld [vmem:[%s806_s19 + $0x68] sm:$0xff]  ;;  %v285_v14 = vld [vmem:[%s806_s19 + $0x70] sm:$0xff] }
  0x19   : > { %282 = vst [vmem:[%s811_s20 + $0x60] sm:$0xff] %v281_v12  ;;  %284 = vst [vmem:[%s811_s20 + $0x68] sm:$0xff] %v283_v13  ;;  %v287_v15 = vld [vmem:[%s806_s19 + $0x78] sm:$0xff]  ;;  %v289_v16 = vld [vmem:[%s806_s19 + $0x80] sm:$0xff] }
  0x1a   : > { %286 = vst [vmem:[%s811_s20 + $0x70] sm:$0xff] %v285_v14  ;;  %v291_v17 = vld [vmem:[%s806_s19 + $0x88] sm:$0xff]  ;;  %288 = vst [vmem:[%s811_s20 + $0x78] sm:$0xff] %v287_v15  ;;  %v293_v18 = vld [vmem:[%s806_s19 + $0x240] sm:$0xff] }
  0x1b   : > { %290 = vst [vmem:[%s811_s20 + $0x80] sm:$0xff] %v289_v16  ;;  %292 = vst [vmem:[%s811_s20 + $0x88] sm:$0xff] %v291_v17  ;;  %v295_v19 = vld [vmem:[%s806_s19 + $0x248] sm:$0xff]  ;;  %v297_v20 = vld [vmem:[%s806_s19 + $0x250] sm:$0xff] }
  0x1c   : > { %294 = vst [vmem:[%s811_s20 + $0x90] sm:$0xff] %v293_v18  ;;  %296 = vst [vmem:[%s811_s20 + $0x98] sm:$0xff] %v295_v19  ;;  %v299_v21 = vld [vmem:[%s806_s19 + $0x258] sm:$0xff]  ;;  %v301_v22 = vld [vmem:[%s806_s19 + $0x260] sm:$0xff] }
  0x1d   : > { %298 = vst [vmem:[%s811_s20 + $0xa0] sm:$0xff] %v297_v20  ;;  %v303_v23 = vld [vmem:[%s806_s19 + $0x268] sm:$0xff]  ;;  %300 = vst [vmem:[%s811_s20 + $0xa8] sm:$0xff] %v299_v21  ;;  %v305_v24 = vld [vmem:[%s806_s19 + $0x270] sm:$0xff] }
  0x1e   : > { %302 = vst [vmem:[%s811_s20 + $0xb0] sm:$0xff] %v301_v22  ;;  %304 = vst [vmem:[%s811_s20 + $0xb8] sm:$0xff] %v303_v23  ;;  %v307_v25 = vld [vmem:[%s806_s19 + $0x278] sm:$0xff]  ;;  %v309_v26 = vld [vmem:[%s806_s19 + $0x280] sm:$0xff] }
  0x1f   : > { %306 = vst [vmem:[%s811_s20 + $0xc0] sm:$0xff] %v305_v24  ;;  %308 = vst [vmem:[%s811_s20 + $0xc8] sm:$0xff] %v307_v25  ;;  %v311_v27 = vld [vmem:[%s806_s19 + $0x288] sm:$0xff]  ;;  %v313_v28 = vld [vmem:[%s806_s19 + $0x290] sm:$0xff] }
  0x20   : > { %310 = vst [vmem:[%s811_s20 + $0xd0] sm:$0xff] %v309_v26  ;;  %v315_v29 = vld [vmem:[%s806_s19 + $0x298] sm:$0xff]  ;;  %312 = vst [vmem:[%s811_s20 + $0xd8] sm:$0xff] %v311_v27  ;;  %v317_v30 = vld [vmem:[%s806_s19 + $0x2a0] sm:$0xff] }
  0x21   : > { %314 = vst [vmem:[%s811_s20 + $0xe0] sm:$0xff] %v313_v28  ;;  %316 = vst [vmem:[%s811_s20 + $0xe8] sm:$0xff] %v315_v29  ;;  %v319_v31 = vld [vmem:[%s806_s19 + $0x2a8] sm:$0xff]  ;;  %v321_v32 = vld [vmem:[%s806_s19 + $0x2b0] sm:$0xff] }
  0x22   : > { %318 = vst [vmem:[%s811_s20 + $0xf0] sm:$0xff] %v317_v30  ;;  %320 = vst [vmem:[%s811_s20 + $0xf8] sm:$0xff] %v319_v31  ;;  %v323_v33 = vld [vmem:[%s806_s19 + $0x2b8] sm:$0xff]  ;;  %v325_v34 = vld [vmem:[%s806_s19 + $0x2c0] sm:$0xff] }
  0x23   : > { %322 = vst [vmem:[%s811_s20 + $0x100] sm:$0xff] %v321_v32  ;;  %v327_v35 = vld [vmem:[%s806_s19 + $0x2c8] sm:$0xff]  ;;  %324 = vst [vmem:[%s811_s20 + $0x108] sm:$0xff] %v323_v33  ;;  %v329_v36 = vld [vmem:[%s806_s19 + $0x480] sm:$0xff] }
  0x24   : > { %326 = vst [vmem:[%s811_s20 + $0x110] sm:$0xff] %v325_v34  ;;  %328 = vst [vmem:[%s811_s20 + $0x118] sm:$0xff] %v327_v35  ;;  %v331_v37 = vld [vmem:[%s806_s19 + $0x488] sm:$0xff]  ;;  %v333_v38 = vld [vmem:[%s806_s19 + $0x490] sm:$0xff] }
  0x25   : > { %330 = vst [vmem:[%s811_s20 + $0x120] sm:$0xff] %v329_v36  ;;  %332 = vst [vmem:[%s811_s20 + $0x128] sm:$0xff] %v331_v37  ;;  %v335_v39 = vld [vmem:[%s806_s19 + $0x498] sm:$0xff]  ;;  %v337_v40 = vld [vmem:[%s806_s19 + $0x4a0] sm:$0xff] }
  0x26   : > { %334 = vst [vmem:[%s811_s20 + $0x130] sm:$0xff] %v333_v38  ;;  %v339_v41 = vld [vmem:[%s806_s19 + $0x4a8] sm:$0xff]  ;;  %336 = vst [vmem:[%s811_s20 + $0x138] sm:$0xff] %v335_v39  ;;  %v341_v42 = vld [vmem:[%s806_s19 + $0x4b0] sm:$0xff] }
  0x27   : > { %338 = vst [vmem:[%s811_s20 + $0x140] sm:$0xff] %v337_v40  ;;  %340 = vst [vmem:[%s811_s20 + $0x148] sm:$0xff] %v339_v41  ;;  %v343_v43 = vld [vmem:[%s806_s19 + $0x4b8] sm:$0xff]  ;;  %v345_v44 = vld [vmem:[%s806_s19 + $0x4c0] sm:$0xff] }
  0x28   : > { %342 = vst [vmem:[%s811_s20 + $0x150] sm:$0xff] %v341_v42  ;;  %344 = vst [vmem:[%s811_s20 + $0x158] sm:$0xff] %v343_v43  ;;  %v347_v45 = vld [vmem:[%s806_s19 + $0x4c8] sm:$0xff]  ;;  %v349_v46 = vld [vmem:[%s806_s19 + $0x4d0] sm:$0xff] }
  0x29   : > { %346 = vst [vmem:[%s811_s20 + $0x160] sm:$0xff] %v345_v44  ;;  %v351_v47 = vld [vmem:[%s806_s19 + $0x4d8] sm:$0xff]  ;;  %348 = vst [vmem:[%s811_s20 + $0x168] sm:$0xff] %v347_v45  ;;  %v353_v48 = vld [vmem:[%s806_s19 + $0x4e0] sm:$0xff] }
  0x2a   : > { %350 = vst [vmem:[%s811_s20 + $0x170] sm:$0xff] %v349_v46  ;;  %352 = vst [vmem:[%s811_s20 + $0x178] sm:$0xff] %v351_v47  ;;  %v355_v49 = vld [vmem:[%s806_s19 + $0x4e8] sm:$0xff]  ;;  %v357_v50 = vld [vmem:[%s806_s19 + $0x4f0] sm:$0xff] }
  0x2b   : > { %354 = vst [vmem:[%s811_s20 + $0x180] sm:$0xff] %v353_v48  ;;  %356 = vst [vmem:[%s811_s20 + $0x188] sm:$0xff] %v355_v49  ;;  %v359_v51 = vld [vmem:[%s806_s19 + $0x4f8] sm:$0xff]  ;;  %v361_v52 = vld [vmem:[%s806_s19 + $0x500] sm:$0xff] }
  0x2c   : > { %358 = vst [vmem:[%s811_s20 + $0x190] sm:$0xff] %v357_v50  ;;  %v363_v53 = vld [vmem:[%s806_s19 + $0x508] sm:$0xff]  ;;  %360 = vst [vmem:[%s811_s20 + $0x198] sm:$0xff] %v359_v51  ;;  %v365_v54 = vld [vmem:[%s806_s19 + $0x6c0] sm:$0xff] }
  0x2d   : > { %362 = vst [vmem:[%s811_s20 + $0x1a0] sm:$0xff] %v361_v52  ;;  %364 = vst [vmem:[%s811_s20 + $0x1a8] sm:$0xff] %v363_v53  ;;  %v367_v55 = vld [vmem:[%s806_s19 + $0x6c8] sm:$0xff]  ;;  %v369_v56 = vld [vmem:[%s806_s19 + $0x6d0] sm:$0xff] }
  0x2e   : > { %366 = vst [vmem:[%s811_s20 + $0x1b0] sm:$0xff] %v365_v54  ;;  %368 = vst [vmem:[%s811_s20 + $0x1b8] sm:$0xff] %v367_v55  ;;  %v371_v57 = vld [vmem:[%s806_s19 + $0x6d8] sm:$0xff]  ;;  %v373_v58 = vld [vmem:[%s806_s19 + $0x6e0] sm:$0xff] }
  0x2f   : > { %370 = vst [vmem:[%s811_s20 + $0x1c0] sm:$0xff] %v369_v56  ;;  %v375_v59 = vld [vmem:[%s806_s19 + $0x6e8] sm:$0xff]  ;;  %372 = vst [vmem:[%s811_s20 + $0x1c8] sm:$0xff] %v371_v57  ;;  %v377_v60 = vld [vmem:[%s806_s19 + $0x6f0] sm:$0xff] }
  0x30   : > { %374 = vst [vmem:[%s811_s20 + $0x1d0] sm:$0xff] %v373_v58  ;;  %376 = vst [vmem:[%s811_s20 + $0x1d8] sm:$0xff] %v375_v59  ;;  %v379_v61 = vld [vmem:[%s806_s19 + $0x6f8] sm:$0xff]  ;;  %v381_v62 = vld [vmem:[%s806_s19 + $0x700] sm:$0xff] }
  0x31   : > { %378 = vst [vmem:[%s811_s20 + $0x1e0] sm:$0xff] %v377_v60  ;;  %380 = vst [vmem:[%s811_s20 + $0x1e8] sm:$0xff] %v379_v61  ;;  %v383_v63 = vld [vmem:[%s806_s19 + $0x708] sm:$0xff]  ;;  %v385_v0 = vld [vmem:[%s806_s19 + $0x710] sm:$0xff] }
  0x32   : > { %382 = vst [vmem:[%s811_s20 + $0x1f0] sm:$0xff] %v381_v62  ;;  %v387_v1 = vld [vmem:[%s806_s19 + $0x718] sm:$0xff]  ;;  %384 = vst [vmem:[%s811_s20 + $0x1f8] sm:$0xff] %v383_v63  ;;  %v389_v2 = vld [vmem:[%s806_s19 + $0x720] sm:$0xff] }
  0x33   : > { %386 = vst [vmem:[%s811_s20 + $0x200] sm:$0xff] %v385_v0  ;;  %388 = vst [vmem:[%s811_s20 + $0x208] sm:$0xff] %v387_v1  ;;  %v391_v3 = vld [vmem:[%s806_s19 + $0x728] sm:$0xff]  ;;  %v393_v4 = vld [vmem:[%s806_s19 + $0x730] sm:$0xff] }
  0x34   : > { %390 = vst [vmem:[%s811_s20 + $0x210] sm:$0xff] %v389_v2  ;;  %392 = vst [vmem:[%s811_s20 + $0x218] sm:$0xff] %v391_v3  ;;  %v395_v5 = vld [vmem:[%s806_s19 + $0x738] sm:$0xff]  ;;  %v397_v6 = vld [vmem:[%s806_s19 + $0x740] sm:$0xff] }
  0x35   : > { %394 = vst [vmem:[%s811_s20 + $0x220] sm:$0xff] %v393_v4  ;;  %v399_v7 = vld [vmem:[%s806_s19 + $0x748] sm:$0xff]  ;;  %396 = vst [vmem:[%s811_s20 + $0x228] sm:$0xff] %v395_v5 }
  0x36   : > { %398 = vst [vmem:[%s811_s20 + $0x230] sm:$0xff] %v397_v6  ;;  %400 = vst [vmem:[%s811_s20 + $0x238] sm:$0xff] %v399_v7 }
  0x37 PF: > { %p653_p5 = scmp.ge.s32.totalorder %s760_s8, 1  ;;  %p405_p6 = scmp.lt.s32.totalorder %s760_s8, 5 }
  0x39   : > { %p406_p7 = pnand %p653_p5, %p405_p6 }
  0x3a   : > { %s412_s21 = sand.u32 (!%p406_p7), 1, %s752_s6   ;;  %s432_s22 = smul.u32 (!%p406_p7), 18, %s648_s9  ;;  %vm567_vm0 = vcmask (!%p406_p7), 162816  }
  0x3b   : > { %409 = sbr.rel (%p406_p7) target bundleno = 93 (0x5d), region = 58 }
  0x3c   : > { %s713_s23 = smul.u32 (!%p406_p7), 576, %s412_s21  ;;  %p433_p8 = scmp.lt.s32.totalorder (!%p406_p7), %s432_s22, 71 }
  0x3e   : > { %s959_s24 = scalar_lea.vmem (!%p406_p7), [#allocation2], %s713_s23 }
  0x3f   : > { %v438_v8 = vld [vmem:[%s959_s24] sm:$0xff] (!%p406_p7)  ;;  %v655_v9 = vld [vmem:[%s959_s24 + $0x90] sm:$0xff] (!%p406_p7)  ;;  %v439_v13 = vld [vmem:[%s959_s24 + $0x8] sm:$0xff] (!%p406_p7) }
  0x40   : > { %v673_v10 = vld [vmem:[%s959_s24 + $0x120] sm:$0xff] (!%p406_p7)  ;;  %v475_v11 = vmax.f32 (!%p406_p7), %v438_v8, %v655_v9  ;;  %v691_v12 = vld [vmem:[%s959_s24 + $0x1b0] sm:$0xff] (!%p406_p7)  ;;  %v656_v14 = vld [vmem:[%s959_s24 + $0x98] sm:$0xff] (!%p406_p7) }
  0x41   : > { %v531_v15 = vmax.f32 (!%p406_p7), %v673_v10, %v691_v12  ;;  %v476_v16 = vmax.f32 (!%p406_p7), %v439_v13, %v656_v14  ;;  %v674_v17 = vld [vmem:[%s959_s24 + $0x128] sm:$0xff] (!%p406_p7)  ;;  %v692_v18 = vld [vmem:[%s959_s24 + $0x1b8] sm:$0xff] (!%p406_p7)  ;;  %v440_v19 = vld [vmem:[%s959_s24 + $0x10] sm:$0xff] (!%p406_p7) }
  0x42   : > { %s1090_s22 = smov (!%p433_p8, %s432_s22), 71  ;;  %v532_v20 = vmax.f32 %v674_v17, %v692_v18  ;;  %v657_v21 = vld [vmem:[%s959_s24 + $0xa0] sm:$0xff]  ;;  %v675_v22 = vld [vmem:[%s959_s24 + $0x130] sm:$0xff]  ;;  %v441_v27 = vld [vmem:[%s959_s24 + $0x18] sm:$0xff] }
  0x43   : > { %s654_s25 = sshll.u32 %s1090_s22, 3  ;;  %v693_v23 = vld [vmem:[%s959_s24 + $0x1c0] sm:$0xff]  ;;  %v549_v24 = vmax.f32 %v475_v11, %v531_v15  ;;  %v477_v25 = vmax.f32 %v440_v19, %v657_v21  ;;  %v658_v28 = vld [vmem:[%s959_s24 + $0xa8] sm:$0xff]  ;;  %v676_v29 = vld [vmem:[%s959_s24 + $0x138] sm:$0xff] }
  0x44   : > { %s973_s28 = scalar_lea.vmem %s1085_s1, %s654_s25  ;;  %v533_v26 = vmax.f32 %v675_v22, %v693_v23  ;;  %v550_v30 = vmax.f32 %v476_v16, %v532_v20  ;;  %v478_v31 = vmax.f32 %v441_v27, %v658_v28  ;;  %v694_v32 = vld [vmem:[%s959_s24 + $0x1c8] sm:$0xff]  ;;  %v442_v33 = vld [vmem:[%s959_s24 + $0x20] sm:$0xff]  ;;  %v659_v34 = vld [vmem:[%s959_s24 + $0xb0] sm:$0xff] }
  0x45   : > { %568 = vst.msk [vmem:[%s973_s28] sm:$0xff] %vm567_vm0, %v549_v24  ;;  %v534_v36 = vmax.f32 %v676_v29, %v694_v32  ;;  %v479_v37 = vmax.f32 %v442_v33, %v659_v34  ;;  %v677_v38 = vld [vmem:[%s959_s24 + $0x140] sm:$0xff]  ;;  %v695_v39 = vld [vmem:[%s959_s24 + $0x1d0] sm:$0xff]  ;;  %v443_v40 = vld [vmem:[%s959_s24 + $0x28] sm:$0xff] }
  0x46   : > { %v551_v35 = vmax.f32 %v477_v25, %v533_v26  ;;  %569 = vst.msk [vmem:[%s973_s28 + $0x8] sm:$0xff] %vm567_vm0, %v550_v30  ;;  %v535_v41 = vmax.f32 %v677_v38, %v695_v39  ;;  %v660_v42 = vld [vmem:[%s959_s24 + $0xb8] sm:$0xff]  ;;  %v678_v43 = vld [vmem:[%s959_s24 + $0x148] sm:$0xff]  ;;  %v444_v48 = vld [vmem:[%s959_s24 + $0x30] sm:$0xff] }
  0x47   : > { %v696_v44 = vld [vmem:[%s959_s24 + $0x1d8] sm:$0xff]  ;;  %v552_v45 = vmax.f32 %v478_v31, %v534_v36  ;;  %v480_v46 = vmax.f32 %v443_v40, %v660_v42  ;;  %v661_v49 = vld [vmem:[%s959_s24 + $0xc0] sm:$0xff]  ;;  %v679_v50 = vld [vmem:[%s959_s24 + $0x150] sm:$0xff] }
  0x48   : > { %570 = vst.msk [vmem:[%s973_s28 + $0x10] sm:$0xff] %vm567_vm0, %v551_v35  ;;  %v536_v47 = vmax.f32 %v678_v43, %v696_v44  ;;  %v553_v51 = vmax.f32 %v479_v37, %v535_v41  ;;  %v481_v52 = vmax.f32 %v444_v48, %v661_v49  ;;  %v697_v53 = vld [vmem:[%s959_s24 + $0x1e0] sm:$0xff]  ;;  %v445_v54 = vld [vmem:[%s959_s24 + $0x38] sm:$0xff]  ;;  %v662_v55 = vld [vmem:[%s959_s24 + $0xc8] sm:$0xff] }
  0x49   : > { %571 = vst.msk [vmem:[%s973_s28 + $0x18] sm:$0xff] %vm567_vm0, %v552_v45  ;;  %v537_v57 = vmax.f32 %v679_v50, %v697_v53  ;;  %v482_v58 = vmax.f32 %v445_v54, %v662_v55  ;;  %v680_v59 = vld [vmem:[%s959_s24 + $0x158] sm:$0xff]  ;;  %v698_v60 = vld [vmem:[%s959_s24 + $0x1e8] sm:$0xff]  ;;  %v446_v61 = vld [vmem:[%s959_s24 + $0x40] sm:$0xff] }
  0x4a   : > { %v554_v56 = vmax.f32 %v480_v46, %v536_v47  ;;  %572 = vst.msk [vmem:[%s973_s28 + $0x20] sm:$0xff] %vm567_vm0, %v553_v51  ;;  %v538_v62 = vmax.f32 %v680_v59, %v698_v60  ;;  %v663_v63 = vld [vmem:[%s959_s24 + $0xd0] sm:$0xff]  ;;  %v681_v0 = vld [vmem:[%s959_s24 + $0x160] sm:$0xff]  ;;  %v447_v5 = vld [vmem:[%s959_s24 + $0x48] sm:$0xff] }
  0x4b   : > { %v699_v1 = vld [vmem:[%s959_s24 + $0x1f0] sm:$0xff]  ;;  %v555_v2 = vmax.f32 %v481_v52, %v537_v57  ;;  %v483_v3 = vmax.f32 %v446_v61, %v663_v63  ;;  %v664_v6 = vld [vmem:[%s959_s24 + $0xd8] sm:$0xff]  ;;  %v682_v7 = vld [vmem:[%s959_s24 + $0x168] sm:$0xff] }
  0x4c   : > { %573 = vst.msk [vmem:[%s973_s28 + $0x28] sm:$0xff] %vm567_vm0, %v554_v56  ;;  %v539_v4 = vmax.f32 %v681_v0, %v699_v1  ;;  %v556_v8 = vmax.f32 %v482_v58, %v538_v62  ;;  %v484_v9 = vmax.f32 %v447_v5, %v664_v6  ;;  %v700_v10 = vld [vmem:[%s959_s24 + $0x1f8] sm:$0xff]  ;;  %v448_v11 = vld [vmem:[%s959_s24 + $0x50] sm:$0xff]  ;;  %v665_v12 = vld [vmem:[%s959_s24 + $0xe0] sm:$0xff] }
  0x4d   : > { %574 = vst.msk [vmem:[%s973_s28 + $0x30] sm:$0xff] %vm567_vm0, %v555_v2  ;;  %v540_v14 = vmax.f32 %v682_v7, %v700_v10  ;;  %v485_v15 = vmax.f32 %v448_v11, %v665_v12  ;;  %v683_v16 = vld [vmem:[%s959_s24 + $0x170] sm:$0xff]  ;;  %v701_v17 = vld [vmem:[%s959_s24 + $0x200] sm:$0xff]  ;;  %v449_v18 = vld [vmem:[%s959_s24 + $0x58] sm:$0xff] }
  0x4e   : > { %v557_v13 = vmax.f32 %v483_v3, %v539_v4  ;;  %575 = vst.msk [vmem:[%s973_s28 + $0x38] sm:$0xff] %vm567_vm0, %v556_v8  ;;  %v541_v19 = vmax.f32 %v683_v16, %v701_v17  ;;  %v666_v20 = vld [vmem:[%s959_s24 + $0xe8] sm:$0xff]  ;;  %v684_v21 = vld [vmem:[%s959_s24 + $0x178] sm:$0xff]  ;;  %v450_v26 = vld [vmem:[%s959_s24 + $0x60] sm:$0xff] }
  0x4f   : > { %v702_v22 = vld [vmem:[%s959_s24 + $0x208] sm:$0xff]  ;;  %v558_v23 = vmax.f32 %v484_v9, %v540_v14  ;;  %v486_v24 = vmax.f32 %v449_v18, %v666_v20  ;;  %v667_v27 = vld [vmem:[%s959_s24 + $0xf0] sm:$0xff]  ;;  %v685_v28 = vld [vmem:[%s959_s24 + $0x180] sm:$0xff] }
  0x50   : > { %576 = vst.msk [vmem:[%s973_s28 + $0x40] sm:$0xff] %vm567_vm0, %v557_v13  ;;  %v542_v25 = vmax.f32 %v684_v21, %v702_v22  ;;  %v559_v29 = vmax.f32 %v485_v15, %v541_v19  ;;  %v487_v30 = vmax.f32 %v450_v26, %v667_v27  ;;  %v703_v31 = vld [vmem:[%s959_s24 + $0x210] sm:$0xff]  ;;  %v451_v32 = vld [vmem:[%s959_s24 + $0x68] sm:$0xff]  ;;  %v668_v33 = vld [vmem:[%s959_s24 + $0xf8] sm:$0xff] }
  0x51   : > { %577 = vst.msk [vmem:[%s973_s28 + $0x48] sm:$0xff] %vm567_vm0, %v558_v23  ;;  %v543_v35 = vmax.f32 %v685_v28, %v703_v31  ;;  %v488_v36 = vmax.f32 %v451_v32, %v668_v33  ;;  %v686_v37 = vld [vmem:[%s959_s24 + $0x188] sm:$0xff]  ;;  %v704_v38 = vld [vmem:[%s959_s24 + $0x218] sm:$0xff]  ;;  %v452_v39 = vld [vmem:[%s959_s24 + $0x70] sm:$0xff] }
  0x52   : > { %v560_v34 = vmax.f32 %v486_v24, %v542_v25  ;;  %578 = vst.msk [vmem:[%s973_s28 + $0x50] sm:$0xff] %vm567_vm0, %v559_v29  ;;  %v544_v40 = vmax.f32 %v686_v37, %v704_v38  ;;  %v669_v41 = vld [vmem:[%s959_s24 + $0x100] sm:$0xff]  ;;  %v687_v42 = vld [vmem:[%s959_s24 + $0x190] sm:$0xff]  ;;  %v453_v47 = vld [vmem:[%s959_s24 + $0x78] sm:$0xff] }
  0x53   : > { %v705_v43 = vld [vmem:[%s959_s24 + $0x220] sm:$0xff]  ;;  %v561_v44 = vmax.f32 %v487_v30, %v543_v35  ;;  %v489_v45 = vmax.f32 %v452_v39, %v669_v41  ;;  %v670_v48 = vld [vmem:[%s959_s24 + $0x108] sm:$0xff]  ;;  %v688_v49 = vld [vmem:[%s959_s24 + $0x198] sm:$0xff] }
  0x54   : > { %579 = vst.msk [vmem:[%s973_s28 + $0x58] sm:$0xff] %vm567_vm0, %v560_v34  ;;  %v545_v46 = vmax.f32 %v687_v42, %v705_v43  ;;  %v562_v50 = vmax.f32 %v488_v36, %v544_v40  ;;  %v490_v51 = vmax.f32 %v453_v47, %v670_v48  ;;  %v706_v52 = vld [vmem:[%s959_s24 + $0x228] sm:$0xff]  ;;  %v454_v53 = vld [vmem:[%s959_s24 + $0x80] sm:$0xff]  ;;  %v671_v54 = vld [vmem:[%s959_s24 + $0x110] sm:$0xff] }
  0x55   : > { %580 = vst.msk [vmem:[%s973_s28 + $0x60] sm:$0xff] %vm567_vm0, %v561_v44  ;;  %v546_v56 = vmax.f32 %v688_v49, %v706_v52  ;;  %v491_v57 = vmax.f32 %v454_v53, %v671_v54  ;;  %v689_v58 = vld [vmem:[%s959_s24 + $0x1a0] sm:$0xff]  ;;  %v707_v59 = vld [vmem:[%s959_s24 + $0x230] sm:$0xff]  ;;  %v455_v60 = vld [vmem:[%s959_s24 + $0x88] sm:$0xff] }
  0x56   : > { %v563_v55 = vmax.f32 %v489_v45, %v545_v46  ;;  %581 = vst.msk [vmem:[%s973_s28 + $0x68] sm:$0xff] %vm567_vm0, %v562_v50  ;;  %v547_v61 = vmax.f32 %v689_v58, %v707_v59  ;;  %v672_v62 = vld [vmem:[%s959_s24 + $0x118] sm:$0xff]  ;;  %v690_v63 = vld [vmem:[%s959_s24 + $0x1a8] sm:$0xff] }
  0x57   : > { %v708_v0 = vld [vmem:[%s959_s24 + $0x238] sm:$0xff]  ;;  %v564_v1 = vmax.f32 %v490_v51, %v546_v56  ;;  %v492_v2 = vmax.f32 %v455_v60, %v672_v62 }
  0x58   : > { %582 = vst.msk [vmem:[%s973_s28 + $0x70] sm:$0xff] %vm567_vm0, %v563_v55  ;;  %v548_v3 = vmax.f32 %v690_v63, %v708_v0  ;;  %v565_v4 = vmax.f32 %v491_v57, %v547_v61 }
  0x59   : > { %583 = vst.msk [vmem:[%s973_s28 + $0x78] sm:$0xff] %vm567_vm0, %v564_v1 }
  0x5a   : > { %v566_v5 = vmax.f32 %v492_v2, %v548_v3  ;;  %584 = vst.msk [vmem:[%s973_s28 + $0x80] sm:$0xff] %vm567_vm0, %v565_v4 }
  0x5c   : > { %585 = vst.msk [vmem:[%s973_s28 + $0x88] sm:$0xff] %vm567_vm0, %v566_v5 }
  0x5d PF: > { %p8_p9 = scmp.ge.s32.totalorder %s789_s10, 6   ;;  %s1086_s6 = smov %s756_s7 }
  0x5e   : > { %s1087_s7 = smov %s798_s13  ;;  %s1088_s8 = smov %s789_s10 }
  0x5f   :  { %10 = sbr.rel (!%p8_p9) target bundleno = 2 (0x2), region = 100 }

// kernel: lenet_forward.8
= control target key start
LH: loop header
LB: loop body
LE: loop exit
PB: predicated region body
PF: predicated region fallthrough
CT: control target
= control target key end

     0   :  { %s342_s6 = smov 0   ;;  %s344_s7 = smov 0   ;;  %s394_s0 = inlined_call_operand.vmem [shape: f32[4,64,50], index: 0, kind: input, shape index: {}]   ;;  %s395_s1 = inlined_call_operand.vmem [shape: f32[64,50], index: 1, kind: output, shape index: {}]  }
   0x1   :  { %s346_s8 = smov 0  }
   0x2 LB: > { %s264_s9 = sadd.s32 4294967295, %s330_s8   ;;  %s359_s10 = sadd.s32 1, %s330_s8   ;;  %s330_s8 = sphi %s346_s8, %s398_s8   ;;  %s326_s7 = sphi %s344_s7, %s397_s7   ;;  %s322_s6 = sphi %s342_s6, %s396_s6  }
   0x3   : > { %s15_s11 = ssub.s32 %s330_s8, %s359_s10  ;;  %s18_s12 = sadd.s32 1, %s326_s7 }
   0x4   : > { %p16_p0 = scmp.eq.s32.totalorder %s15_s11, 0  ;;  %p25_p1 = scmp.ne.s32.totalorder %s326_s7, %s322_s6 }
   0x5   : > { %p26_p2 = scmp.eq.s32.totalorder %s330_s8, 0  ;;  %p267_p4 = scmp.ge.s32.totalorder %s330_s8, 4 }
   0x6   : > { %s368_s13 = scalar_select %p16_p0, %s326_s7, %s18_s12  }
   0x7   : > { %p27_p3 = por %p26_p2, %p25_p1  ;;  %77 = sbr.rel (%p267_p4) target bundleno = 22 (0x16), region = 16 }
   0xe   : > { %80 = sbr.rel (!%p27_p3) target bundleno = 22 (0x16), region = 20  ;;  %s82_s14 = sand.u32 (%p27_p3), 1, %s326_s7  }
   0xf   : > { %s283_s15 = sshll.u32 (%p27_p3), %s330_s8, 4  ;;  %s268_s16 = sshll.u32 (%p27_p3), %s82_s14, 6 }
  0x10   : > { %s87_s19 = scalar_lea.vmem (%p27_p3), %s394_s0, %s283_s15  ;;  %s84_s20 = scalar_lea.vmem (%p27_p3), [#allocation2], %s268_s16 }
  0x11   : > { %v129_v0 = vld [vmem:[%s87_s19] sm:$0xff] (%p27_p3)  ;;  %v131_v1 = vld [vmem:[%s87_s19 + $0x8] sm:$0xff] (%p27_p3) }
  0x12   : > { %v133_v2 = vld [vmem:[%s87_s19 + $0x40] sm:$0xff] (%p27_p3)  ;;  %130 = vst [vmem:[%s84_s20] sm:$0xff] (%p27_p3), %v129_v0  ;;  %132 = vst [vmem:[%s84_s20 + $0x8] sm:$0xff] (%p27_p3), %v131_v1  ;;  %v135_v3 = vld [vmem:[%s87_s19 + $0x48] sm:$0xff] (%p27_p3) }
  0x13   : > { %134 = vst [vmem:[%s84_s20 + $0x10] sm:$0xff] (%p27_p3), %v133_v2  ;;  %v137_v4 = vld [vmem:[%s87_s19 + $0x80] sm:$0xff] (%p27_p3)  ;;  %v139_v5 = vld [vmem:[%s87_s19 + $0x88] sm:$0xff] (%p27_p3)  ;;  %136 = vst [vmem:[%s84_s20 + $0x18] sm:$0xff] (%p27_p3), %v135_v3 }
  0x14   : > { %138 = vst [vmem:[%s84_s20 + $0x20] sm:$0xff] (%p27_p3), %v137_v4  ;;  %140 = vst [vmem:[%s84_s20 + $0x28] sm:$0xff] (%p27_p3), %v139_v5  ;;  %v141_v6 = vld [vmem:[%s87_s19 + $0xc0] sm:$0xff] (%p27_p3)  ;;  %v143_v7 = vld [vmem:[%s87_s19 + $0xc8] sm:$0xff] (%p27_p3) }
  0x15   : > { %142 = vst [vmem:[%s84_s20 + $0x30] sm:$0xff] %v141_v6  ;;  %144 = vst [vmem:[%s84_s20 + $0x38] sm:$0xff] %v143_v7 }
  0x16 PF: > { %p271_p5 = scmp.ge.s32.totalorder %s330_s8, 1  ;;  %p149_p6 = scmp.lt.s32.totalorder %s330_s8, 5 }
  0x18   : > { %p150_p7 = pnand %p271_p5, %p149_p6 }
  0x19   : > { %s156_s21 = sand.u32 (!%p150_p7), 1, %s322_s6   ;;  %s273_s22 = sshll.u32 (!%p150_p7), %s264_s9, 1  ;;  %vm199_vm0 = vcmask (!%p150_p7), 408576  }
  0x1a   : > { %153 = sbr.rel (%p150_p7) target bundleno = 37 (0x25), region = 58  ;;  %s272_s23 = sshll.u32 (!%p150_p7), %s156_s21, 6 }
  0x1b   : > { %p177_p8 = scmp.lt.s32.totalorder (!%p150_p7), %s273_s22, 7  ;;  %s158_s24 = scalar_lea.vmem (!%p150_p7), [#allocation2], %s272_s23 }
  0x1c   : > { %v182_v8 = vld [vmem:[%s158_s24] sm:$0xff] (!%p150_p7)  ;;  %v275_v9 = vld [vmem:[%s158_s24 + $0x10] sm:$0xff] (!%p150_p7)  ;;  %v183_v13 = vld [vmem:[%s158_s24 + $0x8] sm:$0xff] (!%p150_p7) }
  0x1d   : > { %v277_v10 = vld [vmem:[%s158_s24 + $0x20] sm:$0xff] (!%p150_p7)  ;;  %v187_v11 = vmax.f32 (!%p150_p7), %v182_v8, %v275_v9  ;;  %v279_v12 = vld [vmem:[%s158_s24 + $0x30] sm:$0xff] (!%p150_p7)  ;;  %v276_v14 = vld [vmem:[%s158_s24 + $0x18] sm:$0xff] (!%p150_p7) }
  0x1e   : > { %v195_v15 = vmax.f32 (!%p150_p7), %v277_v10, %v279_v12  ;;  %v188_v16 = vmax.f32 (!%p150_p7), %v183_v13, %v276_v14  ;;  %v278_v17 = vld [vmem:[%s158_s24 + $0x28] sm:$0xff] (!%p150_p7)  ;;  %v280_v18 = vld [vmem:[%s158_s24 + $0x38] sm:$0xff] (!%p150_p7) }
  0x1f   : > { %v196_v19 = vmax.f32 (!%p150_p7), %v278_v17, %v280_v18 }
  0x20   : > { %v197_v20 = vmax.f32 (!%p150_p7), %v187_v11, %v195_v15 }
  0x21   : > { %s400_s22 = smov (!%p177_p8, %s273_s22), 7  ;;  %v198_v21 = vmax.f32 %v188_v16, %v196_v19 }
  0x22   : > { %s274_s25 = sshll.u32 %s400_s22, 3 }
  0x23   : > { %s180_s28 = scalar_lea.vmem %s395_s1, %s274_s25 }
  0x24   : > { %200 = vst.msk [vmem:[%s180_s28] sm:$0xff] %vm199_vm0, %v197_v20  ;;  %201 = vst.msk [vmem:[%s180_s28 + $0x8] sm:$0xff] %vm199_vm0, %v198_v21 }
  0x25 PF: > { %p8_p9 = scmp.ge.s32.totalorder %s359_s10, 6   ;;  %s396_s6 = smov %s326_s7 }
  0x26   : > { %s397_s7 = smov %s368_s13  ;;  %s398_s8 = smov %s359_s10 }
  0x27   :  { %10 = sbr.rel (!%p8_p9) target bundleno = 2 (0x2), region = 100 }

// kernel: lenet_forward.7
= control target key start
LH: loop header
LB: loop body
LE: loop exit
PB: predicated region body
PF: predicated region fallthrough
CT: control target
= control target key end

     0   :  { %s980_s12 = smov 0   ;;  %s1152_s0 = inlined_call_operand.vmem [shape: bf16[256,500], index: 0, kind: input, shape index: {}]   ;;  %s1153_s1 = inlined_call_operand.vmem [shape: bf16[500,50], index: 1, kind: input, shape index: {}]   ;;  %s1154_s2 = inlined_call_operand.vmem [shape: f32[1,50], index: 2, kind: input, shape index: {}]   ;;  %s1155_s3 = inlined_call_operand.vmem [shape: f32[256,50], index: 3, kind: output, shape index: {}]  }
   0x1 LB: > { %s741_s13 = sadd.s32 4294967295, %s958_s12   ;;  %p745_p0 = scmp.ge.s32.totalorder %s958_s12, 1  ;;  %s958_s12 = sphi %s980_s12, %s13_s12  }
   0x2   : > { %p139_p1 = scmp.lt.s32.totalorder %s958_s12, 5 }
   0x4   : > { %p140_p2 = pnand %p745_p0, %p139_p1 }
   0x5   : > { %v896_v0 = vld [vmem:[%s1153_s1 + $0x40] sm:$0xff] (!%p140_p2)   ;;  %v900_v4 = vld [vmem:[%s1153_s1 + $0x48] sm:$0xff] (!%p140_p2)   ;;  %v904_v8 = vld [vmem:[%s1153_s1 + $0x50] sm:$0xff] (!%p140_p2)   ;;  %s746_s21 = sshll.u32 (!%p140_p2), %s741_s13, 3  ;;  %vm542_vm0 = vcmask (!%p140_p2), 1041408   ;;  %vm529_vm1 = vcmask (!%p140_p2), 949248  }
   0x6   : > { %143 = sbr.rel (%p140_p2) target bundleno = 285 (0x11d), region = 32  ;;  %v897_v1 = vld [vmem:[%s1153_s1 + $0xc0] sm:$0xff] (!%p140_p2)   ;;  %807 = vmatprep.subr.bf16.mxu0 (!%p140_p2), %v896_v0  ;;  %v901_v5 = vld [vmem:[%s1153_s1 + $0xc8] sm:$0xff] (!%p140_p2)   ;;  %v905_v9 = vld [vmem:[%s1153_s1 + $0xd0] sm:$0xff] (!%p140_p2)   ;;  %p165_p3 = scmp.lt.s32.totalorder (!%p140_p2), %s746_s21, 31  ;;  %vm676_vm2 = vcmask (!%p140_p2), 408576  }
   0x7   : > { %v898_v2 = vld [vmem:[%s1153_s1] sm:$0xff] (!%p140_p2)   ;;  %847 = vmatprep.subr.bf16.mxu1 (!%p140_p2), %v897_v1  ;;  %v902_v6 = vld [vmem:[%s1153_s1 + $0x8] sm:$0xff] (!%p140_p2)   ;;  %v906_v10 = vld [vmem:[%s1153_s1 + $0x10] sm:$0xff] (!%p140_p2)  }
   0x8   : > { %v899_v3 = vld [vmem:[%s1153_s1 + $0x80] sm:$0xff] (!%p140_p2)   ;;  %808 = vmatpush3.bf16.msra.mxu0 (!%p140_p2), %v898_v2  ;;  %v903_v7 = vld [vmem:[%s1153_s1 + $0x88] sm:$0xff] (!%p140_p2)   ;;  %v907_v11 = vld [vmem:[%s1153_s1 + $0x90] sm:$0xff] (!%p140_p2)  }
   0x9   : > { %848 = vmatpush3.bf16.msra.mxu1 (!%p140_p2), %v899_v3  ;;  %809 = vmatprep.subr.bf16.mxu0 (!%p140_p2), %v900_v4  ;;  %v908_v12 = vld [vmem:[%s1153_s1 + $0x58] sm:$0xff] (!%p140_p2)   ;;  %v912_v16 = vld [vmem:[%s1153_s1 + $0x60] sm:$0xff] (!%p140_p2)   ;;  %v916_v20 = vld [vmem:[%s1153_s1 + $0x68] sm:$0xff] (!%p140_p2)  }
   0xa   : > { %849 = vmatprep.subr.bf16.mxu1 (!%p140_p2), %v901_v5  ;;  %v909_v13 = vld [vmem:[%s1153_s1 + $0xd8] sm:$0xff] (!%p140_p2)   ;;  %v913_v17 = vld [vmem:[%s1153_s1 + $0xe0] sm:$0xff] (!%p140_p2)   ;;  %v917_v21 = vld [vmem:[%s1153_s1 + $0xe8] sm:$0xff] (!%p140_p2)  }
   0xb   : > { %v910_v14 = vld [vmem:[%s1153_s1 + $0x18] sm:$0xff] (!%p140_p2)   ;;  %v914_v18 = vld [vmem:[%s1153_s1 + $0x20] sm:$0xff] (!%p140_p2)   ;;  %v918_v22 = vld [vmem:[%s1153_s1 + $0x28] sm:$0xff] (!%p140_p2)  }
   0xc   : > { %810 = vmatpush3.bf16.msra.mxu0 (!%p140_p2), %v902_v6  ;;  %v911_v15 = vld [vmem:[%s1153_s1 + $0x98] sm:$0xff] (!%p140_p2)   ;;  %v915_v19 = vld [vmem:[%s1153_s1 + $0xa0] sm:$0xff] (!%p140_p2)   ;;  %v919_v23 = vld [vmem:[%s1153_s1 + $0xa8] sm:$0xff] (!%p140_p2)  }
   0xd   : > { %850 = vmatpush3.bf16.msra.mxu1 %v903_v7  ;;  %811 = vmatprep.subr.bf16.mxu0 %v904_v8  ;;  %s1157_s21 = smov (!%p165_p3, %s746_s21), 31  ;;  %v920_v24 = vld [vmem:[%s1153_s1 + $0x70] sm:$0xff]   ;;  %v924_v28 = vld [vmem:[%s1153_s1 + $0x78] sm:$0xff]   ;;  %v1117_v49 = vld [vmem:[%s1154_s2] ss:$0 sm:$0xff] }
   0xe   : > { %851 = vmatprep.subr.bf16.mxu1 %v905_v9  ;;  %v921_v25 = vld [vmem:[%s1153_s1 + $0xf0] sm:$0xff]   ;;  %s806_s18 = sshll.u32 %s1157_s21, 4  ;;  %v925_v29 = vld [vmem:[%s1153_s1 + $0xf8] ss:$0 sps:$4 sm:$0x33]   ;;  %s750_s7 = sshll.u32 %s1157_s21, 3 }
   0xf   : > { %v922_v26 = vld [vmem:[%s1153_s1 + $0x30] sm:$0xff]   ;;  %v926_v30 = vld [vmem:[%s1153_s1 + $0x38] sm:$0xff]   ;;  %s1089_s13 = scalar_lea.vmem %s1152_s0, %s806_s18  ;;  %s1124_s10 = scalar_lea.vmem %s1155_s3, %s750_s7 }
  0x10   : > { %812 = vmatpush3.bf16.msra.mxu0 %v906_v10  ;;  %v923_v27 = vld [vmem:[%s1153_s1 + $0xb0] sm:$0xff]   ;;  %v927_v31 = vld [vmem:[%s1153_s1 + $0xb8] sm:$0xff]  }
  0x11   : > { %852 = vmatpush3.bf16.msra.mxu1 %v907_v11  ;;  %813 = vmatprep.subr.bf16.mxu0 %v908_v12  ;;  %v928_v32 = vld [vmem:[%s1089_s13] ss:$16 sps:$4 sm:$0xff]   ;;  %v930_v33 = vld [vmem:[%s1089_s13 + $0x4] ss:$16 sps:$4 sm:$0xff]   ;;  %v931_v34 = vld [vmem:[%s1089_s13 + $0x8] ss:$16 sps:$4 sm:$0xff]  }
  0x12   : > { %853 = vmatprep.subr.bf16.mxu1 %v909_v13  ;;  %578 = vmatprep.mubr.bf16.mxu0 %v930_v33  ;;  %v933_v35 = vld [vmem:[%s1089_s13 + $0xc] ss:$16 sps:$4 sm:$0xff]   ;;  %v934_v36 = vld [vmem:[%s1089_s13 + $0x24] ss:$16 sps:$4 sm:$0xff]   ;;  %v938_v38 = vld [vmem:[%s1089_s13 + $0x20] ss:$16 sps:$4 sm:$0xff]  }
  0x13   : > { %800 = vmatprep.mubr.msk.bf16.mxu1 %vm529_vm1, %v933_v35  ;;  %v936_v37 = vld [vmem:[%s1089_s13 + $0x2c] ss:$16 sps:$4 sm:$0xff]   ;;  %v940_v39 = vld [vmem:[%s1089_s13 + $0x44] ss:$16 sps:$4 sm:$0xff]   ;;  %v939_v40 = vld [vmem:[%s1089_s13 + $0x28] ss:$16 sps:$4 sm:$0xff]  }
  0x14   : > { %814 = vmatpush3.bf16.msra.mxu0 %v910_v14  ;;  %v942_v41 = vld [vmem:[%s1089_s13 + $0x4c] ss:$16 sps:$4 sm:$0xff]   ;;  %v944_v42 = vld [vmem:[%s1089_s13 + $0x40] ss:$16 sps:$4 sm:$0xff]   ;;  %v946_v43 = vld [vmem:[%s1089_s13 + $0x64] ss:$16 sps:$4 sm:$0xff]  }
  0x15   : > { %854 = vmatpush3.bf16.msra.mxu1 %v911_v15  ;;  %815 = vmatprep.subr.bf16.mxu0 %v912_v16  ;;  %v945_v44 = vld [vmem:[%s1089_s13 + $0x48] ss:$16 sps:$4 sm:$0xff]   ;;  %v948_v45 = vld [vmem:[%s1089_s13 + $0x6c] ss:$16 sps:$4 sm:$0xff]   ;;  %v950_v46 = vld [vmem:[%s1089_s13 + $0x60] ss:$16 sps:$4 sm:$0xff]  }
  0x16   : > { %855 = vmatprep.subr.bf16.mxu1 %v913_v17  ;;  %v951_v47 = vld [vmem:[%s1089_s13 + $0x68] ss:$16 sps:$4 sm:$0xff]  }
  0x18   : > { %816 = vmatpush3.bf16.msra.mxu0 %v914_v18 }
  0x19   : > { %856 = vmatpush3.bf16.msra.mxu1 %v915_v19  ;;  %817 = vmatprep.subr.bf16.mxu0 %v916_v20 }
  0x1a   : > { %857 = vmatprep.subr.bf16.mxu1 %v917_v21 }
  0x1c   : > { %818 = vmatpush3.bf16.msra.mxu0 %v918_v22 }
  0x1d   : > { %858 = vmatpush3.bf16.msra.mxu1 %v919_v23  ;;  %819 = vmatprep.subr.bf16.mxu0 %v920_v24 }
  0x1e   : > { %859 = vmatprep.subr.bf16.mxu1 %v921_v25 }
  0x20   : > { %820 = vmatpush3.bf16.msra.mxu0 %v922_v26 }
  0x21   : > { %860 = vmatpush3.bf16.msra.mxu1 %v923_v27  ;;  %821 = vmatprep.subr.bf16.mxu0 %v924_v28 }
  0x22   : > { %887 = vmatprep.subr.msk.bf16.mxu1 %vm542_vm0, %v925_v29 }
  0x24   : > { %822 = vmatpush3.bf16.msra.mxu0 %v926_v30 }
  0x25   : > { %862 = vmatpush3.bf16.msra.mxu1 %v927_v31 }
  0x27   : > { %579 = vmatmul.mubr.bf16.vlgmr.msra.gmra.mrb[0].mxu0 %v928_v32 }
  0x28   : > { %644 = vmatmul.mubr.bf16.vlgmr.msra.gmra.mrb[0].mxu1 %v931_v34  ;;  %586 = vmatprep.mubr.bf16.mxu0 %v934_v36 }
  0x29   : > { %801 = vmatprep.mubr.msk.bf16.mxu1 %vm529_vm1, %v936_v37 }
  0x2f   : > { %587 = vmatmul.mubr.bf16.gmra.mrb[4].mxu0 %v938_v38 }
  0x30   : > { %594 = vmatprep.mubr.bf16.mxu0 %v940_v39  ;;  %652 = vmatmul.mubr.bf16.gmra.mrb[4].mxu1 %v939_v40 }
  0x31   : > { %802 = vmatprep.mubr.msk.bf16.mxu1 %vm529_vm1, %v942_v41 }
  0x37   : > { %595 = vmatmul.mubr.bf16.gmra.mrb[8].mxu0 %v944_v42 }
  0x38   : > { %602 = vmatprep.mubr.bf16.mxu0 %v946_v43  ;;  %660 = vmatmul.mubr.bf16.gmra.mrb[8].mxu1 %v945_v44 }
  0x39   : > { %803 = vmatprep.mubr.msk.bf16.mxu1 %vm529_vm1, %v948_v45 }
  0x3f   : > { %603 = vmatmul.mubr.bf16.gmra.mrb[12].mxu0 %v950_v46 }
  0x40   : > { %668 = vmatmul.mubr.bf16.gmra.mrb[12].mxu1 %v951_v47 }
  0xfa   : > { %v823_v48 = vpop.f32.mrb[0].mxu0 }
  0xfb   : > { %v824_v50 = vpop.f32.mrb[1].mxu0  ;;  %v863_v51 = vpop.f32.mrb[0].mxu1 }
  0xfc   : > { %v825_v52 = vadd.f32 %v824_v50, %v823_v48  ;;  %v826_v53 = vpop.f32.mrb[2].mxu0  ;;  %v864_v54 = vpop.f32.mrb[1].mxu1 }
  0xfd   : > { %v827_v55 = vpop.f32.mrb[3].mxu0  ;;  %v865_v57 = vadd.f32 %v864_v54, %v863_v51  ;;  %v866_v58 = vpop.f32.mrb[2].mxu1 }
  0xfe   : > { %v581_v56 = vadd.f32 %v825_v52, %v1117_v49  ;;  %v828_v59 = vadd.f32 %v827_v55, %v826_v53  ;;  %v867_v60 = vpop.f32.mrb[3].mxu1 }
  0xff   : > { %v868_v63 = vadd.f32 %v867_v60, %v866_v58 }
 0x100   : > { %v646_v61 = vadd.f32 %v865_v57, %v581_v56  ;;  %v584_v62 = vadd.f32 %v828_v59, %v1117_v49 }
 0x102   : > { %677 = vst.msk [vmem:[%s1124_s10] sm:$0xff] %vm676_vm2, %v646_v61  ;;  %v649_v0 = vadd.f32 %v868_v63, %v584_v62  ;;  %v829_v1 = vpop.f32.mrb[4].mxu0 }
 0x103   : > { %v830_v2 = vpop.f32.mrb[5].mxu0  ;;  %v869_v3 = vpop.f32.mrb[4].mxu1 }
 0x104   : > { %678 = vst.msk [vmem:[%s1124_s10 + $0x8] sm:$0xff] %vm676_vm2, %v649_v0  ;;  %v831_v4 = vadd.f32 %v830_v2, %v829_v1  ;;  %v832_v5 = vpop.f32.mrb[6].mxu0  ;;  %v870_v6 = vpop.f32.mrb[5].mxu1 }
 0x105   : > { %v833_v7 = vpop.f32.mrb[7].mxu0  ;;  %v871_v9 = vadd.f32 %v870_v6, %v869_v3  ;;  %v872_v10 = vpop.f32.mrb[6].mxu1 }
 0x106   : > { %v589_v8 = vadd.f32 %v831_v4, %v1117_v49  ;;  %v834_v11 = vadd.f32 %v833_v7, %v832_v5  ;;  %v873_v12 = vpop.f32.mrb[7].mxu1 }
 0x107   : > { %v874_v15 = vadd.f32 %v873_v12, %v872_v10 }
 0x108   : > { %v654_v13 = vadd.f32 %v871_v9, %v589_v8  ;;  %v592_v14 = vadd.f32 %v834_v11, %v1117_v49 }
 0x10a   : > { %679 = vst.msk [vmem:[%s1124_s10 + $0x10] sm:$0xff] %vm676_vm2, %v654_v13  ;;  %v657_v16 = vadd.f32 %v874_v15, %v592_v14  ;;  %v835_v17 = vpop.f32.mrb[8].mxu0 }
 0x10b   : > { %v836_v18 = vpop.f32.mrb[9].mxu0  ;;  %v875_v19 = vpop.f32.mrb[8].mxu1 }
 0x10c   : > { %680 = vst.msk [vmem:[%s1124_s10 + $0x18] sm:$0xff] %vm676_vm2, %v657_v16  ;;  %v837_v20 = vadd.f32 %v836_v18, %v835_v17  ;;  %v838_v21 = vpop.f32.mrb[10].mxu0  ;;  %v876_v22 = vpop.f32.mrb[9].mxu1 }
 0x10d   : > { %v839_v23 = vpop.f32.mrb[11].mxu0  ;;  %v877_v25 = vadd.f32 %v876_v22, %v875_v19  ;;  %v878_v26 = vpop.f32.mrb[10].mxu1 }
 0x10e   : > { %v597_v24 = vadd.f32 %v837_v20, %v1117_v49  ;;  %v840_v27 = vadd.f32 %v839_v23, %v838_v21  ;;  %v879_v28 = vpop.f32.mrb[11].mxu1 }
 0x10f   : > { %v880_v31 = vadd.f32 %v879_v28, %v878_v26 }
 0x110   : > { %v662_v29 = vadd.f32 %v877_v25, %v597_v24  ;;  %v600_v30 = vadd.f32 %v840_v27, %v1117_v49 }
 0x112   : > { %681 = vst.msk [vmem:[%s1124_s10 + $0x20] sm:$0xff] %vm676_vm2, %v662_v29  ;;  %v665_v32 = vadd.f32 %v880_v31, %v600_v30  ;;  %v841_v33 = vpop.f32.mrb[12].mxu0 }
 0x113   : > { %v842_v34 = vpop.f32.mrb[13].mxu0  ;;  %v881_v35 = vpop.f32.mrb[12].mxu1 }
 0x114   : > { %682 = vst.msk [vmem:[%s1124_s10 + $0x28] sm:$0xff] %vm676_vm2, %v665_v32  ;;  %v843_v36 = vadd.f32 %v842_v34, %v841_v33  ;;  %v844_v37 = vpop.f32.mrb[14].mxu0  ;;  %v882_v38 = vpop.f32.mrb[13].mxu1 }
 0x115   : > { %v845_v39 = vpop.f32.mrb[15].mxu0  ;;  %v883_v41 = vadd.f32 %v882_v38, %v881_v35  ;;  %v884_v42 = vpop.f32.mrb[14].mxu1 }
 0x116   : > { %v605_v40 = vadd.f32 %v843_v36, %v1117_v49  ;;  %v846_v43 = vadd.f32 %v845_v39, %v844_v37  ;;  %v885_v44 = vpop.f32.mrb[15].mxu1 }
 0x117   : > { %v886_v47 = vadd.f32 %v885_v44, %v884_v42 }
 0x118   : > { %v670_v45 = vadd.f32 %v883_v41, %v605_v40  ;;  %v608_v46 = vadd.f32 %v846_v43, %v1117_v49 }
 0x11a   : > { %683 = vst.msk [vmem:[%s1124_s10 + $0x30] sm:$0xff] %vm676_vm2, %v670_v45  ;;  %v673_v48 = vadd.f32 %v886_v47, %v608_v46 }
 0x11c   : > { %684 = vst.msk [vmem:[%s1124_s10 + $0x38] sm:$0xff] %vm676_vm2, %v673_v48 }
 0x11d PF: > { %s13_s12 = sadd.s32 1, %s958_s12  }
 0x11e   : > { %p10_p4 = scmp.ge.s32.totalorder %s13_s12, 6  }
 0x120   :  { %12 = sbr.rel (!%p10_p4) target bundleno = 1 (0x1), region = 62 }

// kernel: lenet_forward.9
= control target key start
LH: loop header
LB: loop body
LE: loop exit
PB: predicated region body
PF: predicated region fallthrough
CT: control target
= control target key end

     0   :  { %v226_v36 = vlaneseq  ;;  %v2653_v37 = vmov 1983009808   ;;  %s3436_s0 = inlined_call_operand.vmem [shape: bf16[4,800], index: 0, kind: input, shape index: {}]   ;;  %s3437_s1 = inlined_call_operand.vmem [shape: bf16[800,512], index: 1, kind: input, shape index: {}]   ;;  %s3438_s2 = inlined_call_operand.vmem [shape: f32[1,512], index: 2, kind: input, shape index: {}]   ;;  %s3439_s3 = inlined_call_operand.vmem [shape: bf16[512,128], index: 3, kind: input, shape index: {}]   ;;  %s3440_s4 = inlined_call_operand.vmem [shape: f32[1,128], index: 4, kind: input, shape index: {}]   ;;  %s3441_s5 = inlined_call_operand.hbm [shape: f32[4,128], index: 5, kind: output, shape index: {}]  }
   0x1   :  { %v2295_v0 = vld [vmem:[%s3437_s1 + $0x4] ss:$16 sps:$4 sm:$0xff]   ;;  %v2297_v1 = vld [vmem:[%s3437_s1 + $0xc] ss:$16 sps:$4 sm:$0xff]   ;;  %v2299_v2 = vld [vmem:[%s3437_s1] ss:$16 sps:$4 sm:$0xff]   ;;  %v250_v38 = vunpack.c.l.s4 %v2653_v37 }
   0x2   :  { %1291 = vmatprep.subr.bf16.mxu0 %v2295_v0  ;;  %v2300_v3 = vld [vmem:[%s3437_s1 + $0x8] ss:$16 sps:$4 sm:$0xff]   ;;  %1455 = vmatprep.subr.bf16.mxu1 %v2297_v1  ;;  %v2301_v4 = vld [vmem:[%s3437_s1 + $0x24] ss:$16 sps:$4 sm:$0xff]   ;;  %v2303_v5 = vld [vmem:[%s3437_s1 + $0x2c] ss:$16 sps:$4 sm:$0xff]  }
   0x3   :  { %1292 = vmatpush1.bf16.msra.mxu0 %v2299_v2  ;;  %1456 = vmatpush1.bf16.msra.mxu1 %v2300_v3  ;;  %v2305_v6 = vld [vmem:[%s3437_s1 + $0x20] ss:$16 sps:$4 sm:$0xff]   ;;  %v2306_v7 = vld [vmem:[%s3437_s1 + $0x28] ss:$16 sps:$4 sm:$0xff]   ;;  %v2307_v8 = vld [vmem:[%s3437_s1 + $0x44] ss:$16 sps:$4 sm:$0xff]   ;;  %v251_v43 = vunpack.c.0.s8 %v250_v38 }
   0x4   :  { %1293 = vmatprep.subr.bf16.mxu0 %v2301_v4  ;;  %1457 = vmatprep.subr.bf16.mxu1 %v2303_v5  ;;  %v2309_v9 = vld [vmem:[%s3437_s1 + $0x4c] ss:$16 sps:$4 sm:$0xff]   ;;  %v2311_v10 = vld [vmem:[%s3437_s1 + $0x40] ss:$16 sps:$4 sm:$0xff]   ;;  %v2312_v11 = vld [vmem:[%s3437_s1 + $0x48] ss:$16 sps:$4 sm:$0xff]  }
   0x5   :  { %v2313_v12 = vld [vmem:[%s3437_s1 + $0x64] ss:$16 sps:$4 sm:$0xff]   ;;  %v2315_v13 = vld [vmem:[%s3437_s1 + $0x6c] ss:$16 sps:$4 sm:$0xff]   ;;  %v2317_v14 = vld [vmem:[%s3437_s1 + $0x60] ss:$16 sps:$4 sm:$0xff]  }
   0x6   :  { %v2318_v15 = vld [vmem:[%s3437_s1 + $0x68] ss:$16 sps:$4 sm:$0xff]   ;;  %v2319_v16 = vld [vmem:[%s3437_s1 + $0x84] ss:$16 sps:$4 sm:$0xff]   ;;  %v2321_v17 = vld [vmem:[%s3437_s1 + $0x8c] ss:$16 sps:$4 sm:$0xff]  }
   0x7   :  { %1294 = vmatpush1.bf16.msra.mxu0 %v2305_v6  ;;  %1458 = vmatpush1.bf16.msra.mxu1 %v2306_v7  ;;  %v2323_v18 = vld [vmem:[%s3437_s1 + $0x80] ss:$16 sps:$4 sm:$0xff]   ;;  %v2324_v19 = vld [vmem:[%s3437_s1 + $0x88] ss:$16 sps:$4 sm:$0xff]   ;;  %v2325_v20 = vld [vmem:[%s3437_s1 + $0xa4] ss:$16 sps:$4 sm:$0xff]  }
   0x8   :  { %1295 = vmatprep.subr.bf16.mxu0 %v2307_v8  ;;  %1459 = vmatprep.subr.bf16.mxu1 %v2309_v9  ;;  %v2327_v21 = vld [vmem:[%s3437_s1 + $0xac] ss:$16 sps:$4 sm:$0xff]   ;;  %v2329_v22 = vld [vmem:[%s3437_s1 + $0xa0] ss:$16 sps:$4 sm:$0xff]   ;;  %v2330_v23 = vld [vmem:[%s3437_s1 + $0xa8] ss:$16 sps:$4 sm:$0xff]  }
   0x9   :  { %v2331_v24 = vld [vmem:[%s3437_s1 + $0xc4] ss:$16 sps:$4 sm:$0xff]   ;;  %v2333_v25 = vld [vmem:[%s3437_s1 + $0xcc] ss:$16 sps:$4 sm:$0xff]   ;;  %v2335_v26 = vld [vmem:[%s3437_s1 + $0xc0] ss:$16 sps:$4 sm:$0xff]  }
   0xa   :  { %v2336_v27 = vld [vmem:[%s3437_s1 + $0xc8] ss:$16 sps:$4 sm:$0xff]   ;;  %v2337_v28 = vld [vmem:[%s3437_s1 + $0xe4] ss:$16 sps:$4 sm:$0xff]   ;;  %v2339_v29 = vld [vmem:[%s3437_s1 + $0xec] ss:$16 sps:$4 sm:$0xff]  }
   0xb   :  { %1296 = vmatpush1.bf16.msra.mxu0 %v2311_v10  ;;  %1460 = vmatpush1.bf16.msra.mxu1 %v2312_v11  ;;  %v2341_v30 = vld [vmem:[%s3437_s1 + $0xe0] ss:$16 sps:$4 sm:$0xff]   ;;  %v2342_v31 = vld [vmem:[%s3437_s1 + $0xe8] ss:$16 sps:$4 sm:$0xff]   ;;  %v2343_v32 = vld [vmem:[%s3437_s1 + $0x104] ss:$16 sps:$4 sm:$0xff]  }
   0xc   :  { %1297 = vmatprep.subr.bf16.mxu0 %v2313_v12  ;;  %1461 = vmatprep.subr.bf16.mxu1 %v2315_v13  ;;  %v2345_v33 = vld [vmem:[%s3437_s1 + $0x10c] ss:$16 sps:$4 sm:$0xff]   ;;  %v2347_v34 = vld [vmem:[%s3437_s1 + $0x100] ss:$16 sps:$4 sm:$0xff]   ;;  %v2348_v35 = vld [vmem:[%s3437_s1 + $0x108] ss:$16 sps:$4 sm:$0xff]  }
   0xd   :  { %v2349_v39 = vld [vmem:[%s3437_s1 + $0x124] ss:$16 sps:$4 sm:$0xff]   ;;  %v2351_v40 = vld [vmem:[%s3437_s1 + $0x12c] ss:$16 sps:$4 sm:$0xff]   ;;  %v2353_v41 = vld [vmem:[%s3437_s1 + $0x120] ss:$16 sps:$4 sm:$0xff]  }
   0xe   :  { %v2803_v42 = vshrl.u32 %v226_v36, 7  ;;  %v2354_v44 = vld [vmem:[%s3437_s1 + $0x128] ss:$16 sps:$4 sm:$0xff]   ;;  %v2355_v45 = vld [vmem:[%s3437_s1 + $0x144] ss:$16 sps:$4 sm:$0xff]  }
   0xf   :  { %1298 = vmatpush1.bf16.msra.mxu0 %v2317_v14  ;;  %1462 = vmatpush1.bf16.msra.mxu1 %v2318_v15  ;;  %v2357_v46 = vld [vmem:[%s3437_s1 + $0x14c] ss:$16 sps:$4 sm:$0xff]   ;;  %v2359_v47 = vld [vmem:[%s3437_s1 + $0x140] ss:$16 sps:$4 sm:$0xff]   ;;  %v2360_v48 = vld [vmem:[%s3437_s1 + $0x148] ss:$16 sps:$4 sm:$0xff]  }
  0x10   :  { %1299 = vmatprep.subr.bf16.mxu0 %v2319_v16  ;;  %1463 = vmatprep.subr.bf16.mxu1 %v2321_v17  ;;  %v2821_v49 = vsub.s32 %v251_v43, %v2803_v42  ;;  %v2361_v50 = vld [vmem:[%s3437_s1 + $0x164] ss:$16 sps:$4 sm:$0xff]   ;;  %v2363_v51 = vld [vmem:[%s3437_s1 + $0x16c] ss:$16 sps:$4 sm:$0xff]   ;;  %v2365_v53 = vld [vmem:[%s3437_s1 + $0x160] ss:$16 sps:$4 sm:$0xff]  }
  0x11   :  { %v22_v52 = vld [vmem:[%s3436_s0] sm:$0xff]  ;;  %v2366_v55 = vld [vmem:[%s3437_s1 + $0x168] ss:$16 sps:$4 sm:$0xff]   ;;  %v2369_v57 = vld [vmem:[%s3437_s1 + $0x18c] ss:$16 sps:$4 sm:$0xff]  }
  0x12   :  { %v255_v54 = vrot.slane %v22_v52, %v2821_v49  ;;  %v2367_v56 = vld [vmem:[%s3437_s1 + $0x184] ss:$16 sps:$4 sm:$0xff]   ;;  %v2371_v59 = vld [vmem:[%s3437_s1 + $0x180] ss:$16 sps:$4 sm:$0xff]   ;;  %v2372_v60 = vld [vmem:[%s3437_s1 + $0x188] ss:$16 sps:$4 sm:$0xff]   ;;  %v248_v7 = vcombine.high %v22_v52, %v22_v52 }
  0x13   :  { %1300 = vmatpush1.bf16.msra.mxu0 %v2323_v18  ;;  %1464 = vmatpush1.bf16.msra.mxu1 %v2324_v19  ;;  %v2373_v61 = vld [vmem:[%s3437_s1 + $0x1a4] ss:$16 sps:$4 sm:$0xff]   ;;  %v2375_v62 = vld [vmem:[%s3437_s1 + $0x1ac] ss:$16 sps:$4 sm:$0xff]   ;;  %v2377_v63 = vld [vmem:[%s3437_s1 + $0x1a0] ss:$16 sps:$4 sm:$0xff]  }
  0x14   :  { %1301 = vmatprep.subr.bf16.mxu0 %v2325_v20  ;;  %1465 = vmatprep.subr.bf16.mxu1 %v2327_v21  ;;  %v263_v58 = vcombine.high %v255_v54, %v255_v54  ;;  %v2378_v0 = vld [vmem:[%s3437_s1 + $0x1a8] ss:$16 sps:$4 sm:$0xff]   ;;  %v2379_v1 = vld [vmem:[%s3437_s1 + $0x1c4] ss:$16 sps:$4 sm:$0xff]   ;;  %v2381_v2 = vld [vmem:[%s3437_s1 + $0x1cc] ss:$16 sps:$4 sm:$0xff]   ;;  %v2894_v12 = vrot.slane %v248_v7, %v2821_v49 }
  0x15   :  { %v2383_v3 = vld [vmem:[%s3437_s1 + $0x1c0] ss:$16 sps:$4 sm:$0xff]   ;;  %v2384_v4 = vld [vmem:[%s3437_s1 + $0x1c8] ss:$16 sps:$4 sm:$0xff]   ;;  %v2385_v5 = vld [vmem:[%s3437_s1 + $0x1e4] ss:$16 sps:$4 sm:$0xff]  }
  0x16   :  { %1323 = vmatprep.mubr.bf16.mxu0 %v263_v58  ;;  %1487 = vmatprep.mubr.bf16.mxu1 %v263_v58  ;;  %v2387_v6 = vld [vmem:[%s3437_s1 + $0x1ec] ss:$16 sps:$4 sm:$0xff]   ;;  %v2389_v8 = vld [vmem:[%s3437_s1 + $0x1e0] ss:$16 sps:$4 sm:$0xff]   ;;  %v2390_v9 = vld [vmem:[%s3437_s1 + $0x1e8] ss:$16 sps:$4 sm:$0xff]   ;;  %v264_v17 = vcombine.high %v2894_v12, %v2894_v12 }
  0x17   :  { %1302 = vmatpush1.bf16.msra.mxu0 %v2329_v22  ;;  %1466 = vmatpush1.bf16.msra.mxu1 %v2330_v23  ;;  %v2394_v10 = vld [vmem:[%s3437_s1 + $0x204] ss:$16 sps:$4 sm:$0xff]   ;;  %v2397_v11 = vld [vmem:[%s3437_s1 + $0x20c] ss:$16 sps:$4 sm:$0xff]   ;;  %v2392_v13 = vld [vmem:[%s3437_s1 + $0x200] ss:$16 sps:$4 sm:$0xff]  }
  0x18   :  { %1303 = vmatprep.subr.bf16.mxu0 %v2331_v24  ;;  %1467 = vmatprep.subr.bf16.mxu1 %v2333_v25  ;;  %v2395_v14 = vld [vmem:[%s3437_s1 + $0x208] ss:$16 sps:$4 sm:$0xff]   ;;  %v2400_v15 = vld [vmem:[%s3437_s1 + $0x224] ss:$16 sps:$4 sm:$0xff]   ;;  %v2403_v16 = vld [vmem:[%s3437_s1 + $0x22c] ss:$16 sps:$4 sm:$0xff]  }
  0x19   :  { %v2398_v18 = vld [vmem:[%s3437_s1 + $0x220] ss:$16 sps:$4 sm:$0xff]   ;;  %v2401_v19 = vld [vmem:[%s3437_s1 + $0x228] ss:$16 sps:$4 sm:$0xff]   ;;  %v2406_v20 = vld [vmem:[%s3437_s1 + $0x244] ss:$16 sps:$4 sm:$0xff]  }
  0x1a   :  { %v2409_v21 = vld [vmem:[%s3437_s1 + $0x24c] ss:$16 sps:$4 sm:$0xff]   ;;  %v2404_v22 = vld [vmem:[%s3437_s1 + $0x240] ss:$16 sps:$4 sm:$0xff]   ;;  %v2407_v23 = vld [vmem:[%s3437_s1 + $0x248] ss:$16 sps:$4 sm:$0xff]  }
  0x1b   :  { %1304 = vmatpush1.bf16.msra.mxu0 %v2335_v26  ;;  %1468 = vmatpush1.bf16.msra.mxu1 %v2336_v27  ;;  %v2412_v24 = vld [vmem:[%s3437_s1 + $0x264] ss:$16 sps:$4 sm:$0xff]   ;;  %v2415_v25 = vld [vmem:[%s3437_s1 + $0x26c] ss:$16 sps:$4 sm:$0xff]   ;;  %v2410_v26 = vld [vmem:[%s3437_s1 + $0x260] ss:$16 sps:$4 sm:$0xff]  }
  0x1c   :  { %1305 = vmatprep.subr.bf16.mxu0 %v2337_v28  ;;  %1469 = vmatprep.subr.bf16.mxu1 %v2339_v29  ;;  %v2413_v27 = vld [vmem:[%s3437_s1 + $0x268] ss:$16 sps:$4 sm:$0xff]   ;;  %v2418_v28 = vld [vmem:[%s3437_s1 + $0x284] ss:$16 sps:$4 sm:$0xff]   ;;  %v2421_v29 = vld [vmem:[%s3437_s1 + $0x28c] ss:$16 sps:$4 sm:$0xff]  }
  0x1d   :  { %v2430_v36 = vld [vmem:[%s3437_s1 + $0x2c4] ss:$16 sps:$4 sm:$0xff]   ;;  %v2433_v37 = vld [vmem:[%s3437_s1 + $0x2cc] ss:$16 sps:$4 sm:$0xff]   ;;  %v2428_v38 = vld [vmem:[%s3437_s1 + $0x2c0] ss:$16 sps:$4 sm:$0xff]  }
  0x1e   :  { %v2434_v43 = vld [vmem:[%s3437_s1 + $0x2e0] ss:$16 sps:$4 sm:$0xff]   ;;  %v2460_v58 = vld [vmem:[%s3437_s1 + $0x364] ss:$16 sps:$4 sm:$0xff]   ;;  %v2481_v7 = vld [vmem:[%s3437_s1 + $0x3cc] ss:$16 sps:$4 sm:$0xff]  }
  0x1f   :  { %1306 = vmatpush1.bf16.msra.mxu0 %v2341_v30  ;;  %1470 = vmatpush1.bf16.msra.mxu1 %v2342_v31  ;;  %v2416_v30 = vld [vmem:[%s3437_s1 + $0x280] ss:$16 sps:$4 sm:$0xff]   ;;  %v2419_v31 = vld [vmem:[%s3437_s1 + $0x288] ss:$16 sps:$4 sm:$0xff]  }
  0x20   :  { %1307 = vmatprep.subr.bf16.mxu0 %v2343_v32  ;;  %1471 = vmatprep.subr.bf16.mxu1 %v2345_v33  ;;  %v2424_v32 = vld [vmem:[%s3437_s1 + $0x2a4] ss:$16 sps:$4 sm:$0xff]   ;;  %v2427_v33 = vld [vmem:[%s3437_s1 + $0x2ac] ss:$16 sps:$4 sm:$0xff]   ;;  %v2446_v52 = vld [vmem:[%s3437_s1 + $0x320] ss:$16 sps:$4 sm:$0xff]  }
  0x23   :  { %1308 = vmatpush1.bf16.msra.mxu0 %v2347_v34  ;;  %1472 = vmatpush1.bf16.msra.mxu1 %v2348_v35  ;;  %v2422_v34 = vld [vmem:[%s3437_s1 + $0x2a0] ss:$16 sps:$4 sm:$0xff]   ;;  %v2425_v35 = vld [vmem:[%s3437_s1 + $0x2a8] ss:$16 sps:$4 sm:$0xff]  }
  0x24   :  { %1309 = vmatprep.subr.bf16.mxu0 %v2349_v39  ;;  %1473 = vmatprep.subr.bf16.mxu1 %v2351_v40  ;;  %v2431_v39 = vld [vmem:[%s3437_s1 + $0x2c8] ss:$16 sps:$4 sm:$0xff]   ;;  %v2436_v40 = vld [vmem:[%s3437_s1 + $0x2e4] ss:$16 sps:$4 sm:$0xff]  }
  0x27   :  { %1310 = vmatpush1.bf16.msra.mxu0 %v2353_v41  ;;  %1474 = vmatpush1.bf16.msra.mxu1 %v2354_v44  ;;  %v2439_v41 = vld [vmem:[%s3437_s1 + $0x2ec] ss:$16 sps:$4 sm:$0xff]   ;;  %v2437_v44 = vld [vmem:[%s3437_s1 + $0x2e8] ss:$16 sps:$4 sm:$0xff]  }
  0x28   :  { %1311 = vmatprep.subr.bf16.mxu0 %v2355_v45  ;;  %1475 = vmatprep.subr.bf16.mxu1 %v2357_v46  ;;  %v2442_v45 = vld [vmem:[%s3437_s1 + $0x304] ss:$16 sps:$4 sm:$0xff]   ;;  %v2445_v46 = vld [vmem:[%s3437_s1 + $0x30c] ss:$16 sps:$4 sm:$0xff]  }
  0x2b   :  { %1312 = vmatpush1.bf16.msra.mxu0 %v2359_v47  ;;  %1476 = vmatpush1.bf16.msra.mxu1 %v2360_v48  ;;  %v2440_v47 = vld [vmem:[%s3437_s1 + $0x300] ss:$16 sps:$4 sm:$0xff]   ;;  %v2443_v48 = vld [vmem:[%s3437_s1 + $0x308] ss:$16 sps:$4 sm:$0xff]  }
  0x2c   :  { %1313 = vmatprep.subr.bf16.mxu0 %v2361_v50  ;;  %1477 = vmatprep.subr.bf16.mxu1 %v2363_v51  ;;  %v2448_v50 = vld [vmem:[%s3437_s1 + $0x324] ss:$16 sps:$4 sm:$0xff]   ;;  %v2451_v51 = vld [vmem:[%s3437_s1 + $0x32c] ss:$16 sps:$4 sm:$0xff]  }
  0x2f   :  { %1314 = vmatpush1.bf16.msra.mxu0 %v2365_v53  ;;  %1478 = vmatpush1.bf16.msra.mxu1 %v2366_v55  ;;  %v2449_v53 = vld [vmem:[%s3437_s1 + $0x328] ss:$16 sps:$4 sm:$0xff]   ;;  %v2457_v55 = vld [vmem:[%s3437_s1 + $0x34c] ss:$16 sps:$4 sm:$0xff]  }
  0x30   :  { %1315 = vmatprep.subr.bf16.mxu0 %v2367_v56  ;;  %1479 = vmatprep.subr.bf16.mxu1 %v2369_v57  ;;  %v2452_v56 = vld [vmem:[%s3437_s1 + $0x340] ss:$16 sps:$4 sm:$0xff]   ;;  %v2455_v57 = vld [vmem:[%s3437_s1 + $0x348] ss:$16 sps:$4 sm:$0xff]  }
  0x33   :  { %1316 = vmatpush1.bf16.msra.mxu0 %v2371_v59  ;;  %1480 = vmatpush1.bf16.msra.mxu1 %v2372_v60  ;;  %v2463_v59 = vld [vmem:[%s3437_s1 + $0x36c] ss:$16 sps:$4 sm:$0xff]   ;;  %v2458_v60 = vld [vmem:[%s3437_s1 + $0x360] ss:$16 sps:$4 sm:$0xff]  }
  0x34   :  { %1317 = vmatprep.subr.bf16.mxu0 %v2373_v61  ;;  %1481 = vmatprep.subr.bf16.mxu1 %v2375_v62  ;;  %v2461_v61 = vld [vmem:[%s3437_s1 + $0x368] ss:$16 sps:$4 sm:$0xff]   ;;  %v2466_v62 = vld [vmem:[%s3437_s1 + $0x384] ss:$16 sps:$4 sm:$0xff]  }
  0x37   :  { %1318 = vmatpush1.bf16.msra.mxu0 %v2377_v63  ;;  %1482 = vmatpush1.bf16.msra.mxu1 %v2378_v0  ;;  %v2469_v63 = vld [vmem:[%s3437_s1 + $0x38c] ss:$16 sps:$4 sm:$0xff]   ;;  %v2464_v0 = vld [vmem:[%s3437_s1 + $0x380] ss:$16 sps:$4 sm:$0xff]  }
  0x38   :  { %1319 = vmatprep.subr.bf16.mxu0 %v2379_v1  ;;  %1483 = vmatprep.subr.bf16.mxu1 %v2381_v2  ;;  %v2467_v1 = vld [vmem:[%s3437_s1 + $0x388] ss:$16 sps:$4 sm:$0xff]   ;;  %v2472_v2 = vld [vmem:[%s3437_s1 + $0x3a4] ss:$16 sps:$4 sm:$0xff]  }
  0x3b   :  { %1320 = vmatpush1.bf16.msra.mxu0 %v2383_v3  ;;  %1484 = vmatpush1.bf16.msra.mxu1 %v2384_v4  ;;  %v2475_v3 = vld [vmem:[%s3437_s1 + $0x3ac] ss:$16 sps:$4 sm:$0xff]   ;;  %v2470_v4 = vld [vmem:[%s3437_s1 + $0x3a0] ss:$16 sps:$4 sm:$0xff]  }
  0x3c   :  { %1321 = vmatprep.subr.bf16.mxu0 %v2385_v5  ;;  %1485 = vmatprep.subr.bf16.mxu1 %v2387_v6  ;;  %v2473_v5 = vld [vmem:[%s3437_s1 + $0x3a8] ss:$16 sps:$4 sm:$0xff]   ;;  %v2478_v6 = vld [vmem:[%s3437_s1 + $0x3c4] ss:$16 sps:$4 sm:$0xff]  }
  0x3f   :  { %1322 = vmatpush1.bf16.msra.mxu0 %v2389_v8  ;;  %1486 = vmatpush1.bf16.msra.mxu1 %v2390_v9  ;;  %v2476_v8 = vld [vmem:[%s3437_s1 + $0x3c0] ss:$16 sps:$4 sm:$0xff]   ;;  %v2479_v9 = vld [vmem:[%s3437_s1 + $0x3c8] ss:$16 sps:$4 sm:$0xff]  }
  0x40   :  { %1332 = vmatprep.subr.bf16.mxu0 %v2394_v10  ;;  %1496 = vmatprep.subr.bf16.mxu1 %v2397_v11  ;;  %v2484_v10 = vld [vmem:[%s3437_s1 + $0x3e4] ss:$16 sps:$4 sm:$0xff]   ;;  %v2487_v11 = vld [vmem:[%s3437_s1 + $0x3ec] ss:$16 sps:$4 sm:$0xff]  }
  0x42   :  { %1324 = vmatmul.mubr.bf16.vlgmr.msra.gmra.mrb[0].mxu0 %v255_v54  ;;  %1488 = vmatmul.mubr.bf16.vlgmr.msra.gmra.mrb[0].mxu1 %v255_v54  ;;  %v2454_v54 = vld [vmem:[%s3437_s1 + $0x344] ss:$16 sps:$4 sm:$0xff]  }
  0x43   :  { %1333 = vmatpush1.bf16.msra.mxu0 %v2392_v13  ;;  %1497 = vmatpush1.bf16.msra.mxu1 %v2395_v14  ;;  %v2482_v13 = vld [vmem:[%s3437_s1 + $0x3e0] ss:$16 sps:$4 sm:$0xff]   ;;  %v2485_v14 = vld [vmem:[%s3437_s1 + $0x3e8] ss:$16 sps:$4 sm:$0xff]  }
  0x44   :  { %1334 = vmatprep.subr.bf16.mxu0 %v2400_v15  ;;  %1498 = vmatprep.subr.bf16.mxu1 %v2403_v16  ;;  %v2490_v15 = vld [vmem:[%s3437_s1 + $0x404] ss:$16 sps:$4 sm:$0xff]   ;;  %v2493_v16 = vld [vmem:[%s3437_s1 + $0x40c] ss:$16 sps:$4 sm:$0xff]  }
  0x45   :  { %1364 = vmatprep.mubr.bf16.mxu0 %v264_v17  ;;  %1528 = vmatprep.mubr.bf16.mxu1 %v264_v17  ;;  %v2488_v17 = vld [vmem:[%s3437_s1 + $0x400] ss:$16 sps:$4 sm:$0xff]  }
  0x47   :  { %1335 = vmatpush1.bf16.msra.mxu0 %v2398_v18  ;;  %1499 = vmatpush1.bf16.msra.mxu1 %v2401_v19  ;;  %v2491_v18 = vld [vmem:[%s3437_s1 + $0x408] ss:$16 sps:$4 sm:$0xff]  }
  0x48   :  { %1336 = vmatprep.subr.bf16.mxu0 %v2406_v20  ;;  %1500 = vmatprep.subr.bf16.mxu1 %v2409_v21  ;;  %v3099_v19 = vld [vmem:[%s3436_s0 + $0x8] sm:$0x3f]  ;;  %v2496_v20 = vld [vmem:[%s3437_s1 + $0x424] ss:$16 sps:$4 sm:$0xff]  }
  0x49   :  { %v2499_v21 = vld [vmem:[%s3437_s1 + $0x42c] ss:$16 sps:$4 sm:$0xff]  }
  0x4b   :  { %1337 = vmatpush1.bf16.msra.mxu0 %v2404_v22  ;;  %1501 = vmatpush1.bf16.msra.mxu1 %v2407_v23  ;;  %v3109_v22 = vrot.slane %v3099_v19, %v2821_v49 }
  0x4c   :  { %1338 = vmatprep.subr.bf16.mxu0 %v2412_v24  ;;  %1502 = vmatprep.subr.bf16.mxu1 %v2415_v25  ;;  %v2494_v24 = vld [vmem:[%s3437_s1 + $0x420] ss:$16 sps:$4 sm:$0xff]   ;;  %v2497_v25 = vld [vmem:[%s3437_s1 + $0x428] ss:$16 sps:$4 sm:$0xff]  }
  0x4d   :  { %v280_v23 = vcombine.high %v3109_v22, %v3109_v22 }
  0x4f   :  { %1339 = vmatpush1.bf16.msra.mxu0 %v2410_v26  ;;  %1503 = vmatpush1.bf16.msra.mxu1 %v2413_v27  ;;  %v2502_v26 = vld [vmem:[%s3437_s1 + $0x444] ss:$16 sps:$4 sm:$0xff]   ;;  %v2500_v27 = vld [vmem:[%s3437_s1 + $0x440] ss:$16 sps:$4 sm:$0xff]  }
  0x50   :  { %1340 = vmatprep.subr.bf16.mxu0 %v2418_v28  ;;  %1504 = vmatprep.subr.bf16.mxu1 %v2421_v29  ;;  %v2503_v28 = vld [vmem:[%s3437_s1 + $0x448] ss:$16 sps:$4 sm:$0xff]   ;;  %v2508_v29 = vld [vmem:[%s3437_s1 + $0x464] ss:$16 sps:$4 sm:$0xff]  }
  0x53   :  { %1341 = vmatpush1.bf16.msra.mxu0 %v2416_v30  ;;  %1505 = vmatpush1.bf16.msra.mxu1 %v2419_v31  ;;  %v2511_v30 = vld [vmem:[%s3437_s1 + $0x46c] ss:$16 sps:$4 sm:$0xff]   ;;  %v2506_v31 = vld [vmem:[%s3437_s1 + $0x460] ss:$16 sps:$4 sm:$0xff]  }
  0x54   :  { %1342 = vmatprep.subr.bf16.mxu0 %v2424_v32  ;;  %1506 = vmatprep.subr.bf16.mxu1 %v2427_v33  ;;  %v2509_v32 = vld [vmem:[%s3437_s1 + $0x468] ss:$16 sps:$4 sm:$0xff]   ;;  %v2514_v33 = vld [vmem:[%s3437_s1 + $0x484] ss:$16 sps:$4 sm:$0xff]  }
  0x57   :  { %1343 = vmatpush1.bf16.msra.mxu0 %v2422_v34  ;;  %1507 = vmatpush1.bf16.msra.mxu1 %v2425_v35  ;;  %v2517_v34 = vld [vmem:[%s3437_s1 + $0x48c] ss:$16 sps:$4 sm:$0xff]   ;;  %v2512_v35 = vld [vmem:[%s3437_s1 + $0x480] ss:$16 sps:$4 sm:$0xff]  }
  0x58   :  { %1344 = vmatprep.subr.bf16.mxu0 %v2430_v36  ;;  %1508 = vmatprep.subr.bf16.mxu1 %v2433_v37  ;;  %v2515_v36 = vld [vmem:[%s3437_s1 + $0x488] ss:$16 sps:$4 sm:$0xff]   ;;  %v2520_v37 = vld [vmem:[%s3437_s1 + $0x4a4] ss:$16 sps:$4 sm:$0xff]  }
  0x5b   :  { %1345 = vmatpush1.bf16.msra.mxu0 %v2428_v38  ;;  %1509 = vmatpush1.bf16.msra.mxu1 %v2431_v39  ;;  %v2523_v38 = vld [vmem:[%s3437_s1 + $0x4ac] ss:$16 sps:$4 sm:$0xff]   ;;  %v2518_v39 = vld [vmem:[%s3437_s1 + $0x4a0] ss:$16 sps:$4 sm:$0xff]  }
  0x5c   :  { %1346 = vmatprep.subr.bf16.mxu0 %v2436_v40  ;;  %1510 = vmatprep.subr.bf16.mxu1 %v2439_v41  ;;  %v2521_v40 = vld [vmem:[%s3437_s1 + $0x4a8] ss:$16 sps:$4 sm:$0xff]   ;;  %v2526_v41 = vld [vmem:[%s3437_s1 + $0x4c4] ss:$16 sps:$4 sm:$0xff]  }
  0x5f   :  { %1347 = vmatpush1.bf16.msra.mxu0 %v2434_v43  ;;  %1511 = vmatpush1.bf16.msra.mxu1 %v2437_v44  ;;  %v2529_v43 = vld [vmem:[%s3437_s1 + $0x4cc] ss:$16 sps:$4 sm:$0xff]   ;;  %v2524_v44 = vld [vmem:[%s3437_s1 + $0x4c0] ss:$16 sps:$4 sm:$0xff]  }
  0x60   :  { %1348 = vmatprep.subr.bf16.mxu0 %v2442_v45  ;;  %1512 = vmatprep.subr.bf16.mxu1 %v2445_v46  ;;  %v2527_v45 = vld [vmem:[%s3437_s1 + $0x4c8] ss:$16 sps:$4 sm:$0xff]   ;;  %v2532_v46 = vld [vmem:[%s3437_s1 + $0x4e4] ss:$16 sps:$4 sm:$0xff]  }
  0x63   :  { %1349 = vmatpush1.bf16.msra.mxu0 %v2440_v47  ;;  %1513 = vmatpush1.bf16.msra.mxu1 %v2443_v48  ;;  %v2535_v47 = vld [vmem:[%s3437_s1 + $0x4ec] ss:$16 sps:$4 sm:$0xff]   ;;  %v2530_v48 = vld [vmem:[%s3437_s1 + $0x4e0] ss:$16 sps:$4 sm:$0xff]  }
  0x64   :  { %1350 = vmatprep.subr.bf16.mxu0 %v2448_v50  ;;  %1514 = vmatprep.subr.bf16.mxu1 %v2451_v51  ;;  %v2533_v50 = vld [vmem:[%s3437_s1 + $0x4e8] ss:$16 sps:$4 sm:$0xff]   ;;  %v2538_v51 = vld [vmem:[%s3437_s1 + $0x504] ss:$16 sps:$4 sm:$0xff]  }
  0x67   :  { %1351 = vmatpush1.bf16.msra.mxu0 %v2446_v52  ;;  %1515 = vmatpush1.bf16.msra.mxu1 %v2449_v53  ;;  %v2541_v52 = vld [vmem:[%s3437_s1 + $0x50c] ss:$16 sps:$4 sm:$0xff]   ;;  %v2536_v53 = vld [vmem:[%s3437_s1 + $0x500] ss:$16 sps:$4 sm:$0xff]  }
  0x68   :  { %1352 = vmatprep.subr.bf16.mxu0 %v2454_v54  ;;  %1516 = vmatprep.subr.bf16.mxu1 %v2457_v55  ;;  %v2539_v54 = vld [vmem:[%s3437_s1 + $0x508] ss:$16 sps:$4 sm:$0xff]   ;;  %v2544_v55 = vld [vmem:[%s3437_s1 + $0x524] ss:$16 sps:$4 sm:$0xff]  }
  0x6b   :  { %1353 = vmatpush1.bf16.msra.mxu0 %v2452_v56  ;;  %1517 = vmatpush1.bf16.msra.mxu1 %v2455_v57  ;;  %v2547_v56 = vld [vmem:[%s3437_s1 + $0x52c] ss:$16 sps:$4 sm:$0xff]  }
  0x6c   :  { %1354 = vmatprep.subr.bf16.mxu0 %v2460_v58  ;;  %1518 = vmatprep.subr.bf16.mxu1 %v2463_v59 }
  0x6f   :  { %1355 = vmatpush1.bf16.msra.mxu0 %v2458_v60  ;;  %1519 = vmatpush1.bf16.msra.mxu1 %v2461_v61 }
  0x70   :  { %1356 = vmatprep.subr.bf16.mxu0 %v2466_v62  ;;  %1520 = vmatprep.subr.bf16.mxu1 %v2469_v63 }
  0x73   :  { %1357 = vmatpush1.bf16.msra.mxu0 %v2464_v0  ;;  %1521 = vmatpush1.bf16.msra.mxu1 %v2467_v1 }
  0x74   :  { %1358 = vmatprep.subr.bf16.mxu0 %v2472_v2  ;;  %1522 = vmatprep.subr.bf16.mxu1 %v2475_v3 }
  0x77   :  { %1359 = vmatpush1.bf16.msra.mxu0 %v2470_v4  ;;  %1523 = vmatpush1.bf16.msra.mxu1 %v2473_v5 }
  0x78   :  { %1360 = vmatprep.subr.bf16.mxu0 %v2478_v6  ;;  %1524 = vmatprep.subr.bf16.mxu1 %v2481_v7 }
  0x7b   :  { %1361 = vmatpush1.bf16.msra.mxu0 %v2476_v8  ;;  %1525 = vmatpush1.bf16.msra.mxu1 %v2479_v9 }
  0x7c   :  { %1362 = vmatprep.subr.bf16.mxu0 %v2484_v10  ;;  %1526 = vmatprep.subr.bf16.mxu1 %v2487_v11 }
  0x7f   :  { %1363 = vmatpush1.bf16.msra.mxu0 %v2482_v13  ;;  %1527 = vmatpush1.bf16.msra.mxu1 %v2485_v14 }
  0x80   :  { %1373 = vmatprep.subr.bf16.mxu0 %v2490_v15  ;;  %1537 = vmatprep.subr.bf16.mxu1 %v2493_v16 }
  0x82   :  { %1365 = vmatmul.mubr.bf16.vlgmr.msra.gmra.mrb[0].mxu0 %v2894_v12  ;;  %1529 = vmatmul.mubr.bf16.vlgmr.msra.gmra.mrb[0].mxu1 %v2894_v12  ;;  %v2505_v12 = vld [vmem:[%s3437_s1 + $0x44c] ss:$16 sps:$4 sm:$0xff]  }
  0x83   :  { %1374 = vmatpush1.bf16.msra.mxu0 %v2488_v17  ;;  %1538 = vmatpush1.bf16.msra.mxu1 %v2491_v18 }
  0x84   :  { %1375 = vmatprep.subr.bf16.mxu0 %v2496_v20  ;;  %1539 = vmatprep.subr.bf16.mxu1 %v2499_v21 }
  0x85   :  { %1405 = vmatprep.mubr.bf16.mxu0 %v280_v23  ;;  %1569 = vmatprep.mubr.bf16.mxu1 %v280_v23 }
  0x87   :  { %1376 = vmatpush1.bf16.msra.mxu0 %v2494_v24  ;;  %1540 = vmatpush1.bf16.msra.mxu1 %v2497_v25 }
  0x88   :  { %1377 = vmatprep.subr.bf16.mxu0 %v2502_v26  ;;  %1541 = vmatprep.subr.bf16.mxu1 %v2505_v12 }
  0x8b   :  { %1378 = vmatpush1.bf16.msra.mxu0 %v2500_v27  ;;  %1542 = vmatpush1.bf16.msra.mxu1 %v2503_v28 }
  0x8c   :  { %1379 = vmatprep.subr.bf16.mxu0 %v2508_v29  ;;  %1543 = vmatprep.subr.bf16.mxu1 %v2511_v30 }
  0x8f   :  { %1380 = vmatpush1.bf16.msra.mxu0 %v2506_v31  ;;  %1544 = vmatpush1.bf16.msra.mxu1 %v2509_v32 }
  0x90   :  { %1381 = vmatprep.subr.bf16.mxu0 %v2514_v33  ;;  %1545 = vmatprep.subr.bf16.mxu1 %v2517_v34 }
  0x93   :  { %1382 = vmatpush1.bf16.msra.mxu0 %v2512_v35  ;;  %1546 = vmatpush1.bf16.msra.mxu1 %v2515_v36 }
  0x94   :  { %1383 = vmatprep.subr.bf16.mxu0 %v2520_v37  ;;  %1547 = vmatprep.subr.bf16.mxu1 %v2523_v38 }
  0x97   :  { %1384 = vmatpush1.bf16.msra.mxu0 %v2518_v39  ;;  %1548 = vmatpush1.bf16.msra.mxu1 %v2521_v40 }
  0x98   :  { %1385 = vmatprep.subr.bf16.mxu0 %v2526_v41  ;;  %1549 = vmatprep.subr.bf16.mxu1 %v2529_v43 }
  0x9b   :  { %1386 = vmatpush1.bf16.msra.mxu0 %v2524_v44  ;;  %1550 = vmatpush1.bf16.msra.mxu1 %v2527_v45 }
  0x9c   :  { %1387 = vmatprep.subr.bf16.mxu0 %v2532_v46  ;;  %1551 = vmatprep.subr.bf16.mxu1 %v2535_v47 }
  0x9f   :  { %1388 = vmatpush1.bf16.msra.mxu0 %v2530_v48  ;;  %1552 = vmatpush1.bf16.msra.mxu1 %v2533_v50 }
  0xa0   :  { %1389 = vmatprep.subr.bf16.mxu0 %v2538_v51  ;;  %1553 = vmatprep.subr.bf16.mxu1 %v2541_v52 }
  0xa1   :  { %10 = vsyncpa [#allocation3], 0  ;;  %v2542_v57 = vld [vmem:[%s3437_s1 + $0x520] ss:$16 sps:$4 sm:$0xff]   ;;  %v2545_v58 = vld [vmem:[%s3437_s1 + $0x528] ss:$16 sps:$4 sm:$0xff]   ;;  %v265_v31 = vcombine.high %v3099_v19, %v3099_v19 }
  0xa2   :  { %v2550_v59 = vld [vmem:[%s3437_s1 + $0x544] ss:$16 sps:$4 sm:$0xff]   ;;  %v2553_v60 = vld [vmem:[%s3437_s1 + $0x54c] ss:$16 sps:$4 sm:$0xff]   ;;  %v2548_v61 = vld [vmem:[%s3437_s1 + $0x540] ss:$16 sps:$4 sm:$0xff]  }
  0xa3   :  { %1390 = vmatpush1.bf16.msra.mxu0 %v2536_v53  ;;  %1554 = vmatpush1.bf16.msra.mxu1 %v2539_v54  ;;  %v2551_v62 = vld [vmem:[%s3437_s1 + $0x548] ss:$16 sps:$4 sm:$0xff]   ;;  %v2556_v63 = vld [vmem:[%s3437_s1 + $0x564] ss:$16 sps:$4 sm:$0xff]   ;;  %v2559_v0 = vld [vmem:[%s3437_s1 + $0x56c] ss:$16 sps:$4 sm:$0xff]   ;;  %v279_v32 = vrot.slane %v265_v31, %v2821_v49 }
  0xa4   :  { %1391 = vmatprep.subr.bf16.mxu0 %v2544_v55  ;;  %1555 = vmatprep.subr.bf16.mxu1 %v2547_v56  ;;  %v2554_v1 = vld [vmem:[%s3437_s1 + $0x560] ss:$16 sps:$4 sm:$0xff]   ;;  %v2557_v2 = vld [vmem:[%s3437_s1 + $0x568] ss:$16 sps:$4 sm:$0xff]   ;;  %v2562_v3 = vld [vmem:[%s3437_s1 + $0x584] ss:$16 sps:$4 sm:$0xff]  }
  0xa5   :  { %v2565_v4 = vld [vmem:[%s3437_s1 + $0x58c] ss:$16 sps:$4 sm:$0xff]   ;;  %v2560_v5 = vld [vmem:[%s3437_s1 + $0x580] ss:$16 sps:$4 sm:$0xff]   ;;  %v2563_v6 = vld [vmem:[%s3437_s1 + $0x588] ss:$16 sps:$4 sm:$0xff]  }
  0xa6   :  { %v2568_v7 = vld [vmem:[%s3437_s1 + $0x5a4] ss:$16 sps:$4 sm:$0xff]   ;;  %v2571_v8 = vld [vmem:[%s3437_s1 + $0x5ac] ss:$16 sps:$4 sm:$0xff]   ;;  %v2566_v9 = vld [vmem:[%s3437_s1 + $0x5a0] ss:$16 sps:$4 sm:$0xff]  }
  0xa7   :  { %1392 = vmatpush1.bf16.msra.mxu0 %v2542_v57  ;;  %1556 = vmatpush1.bf16.msra.mxu1 %v2545_v58  ;;  %v2569_v10 = vld [vmem:[%s3437_s1 + $0x5a8] ss:$16 sps:$4 sm:$0xff]   ;;  %v2574_v11 = vld [vmem:[%s3437_s1 + $0x5c4] ss:$16 sps:$4 sm:$0xff]   ;;  %v2577_v13 = vld [vmem:[%s3437_s1 + $0x5cc] ss:$16 sps:$4 sm:$0xff]  }
  0xa8   :  { %1393 = vmatprep.subr.bf16.mxu0 %v2550_v59  ;;  %1557 = vmatprep.subr.bf16.mxu1 %v2553_v60  ;;  %v2572_v14 = vld [vmem:[%s3437_s1 + $0x5c0] ss:$16 sps:$4 sm:$0xff]   ;;  %v2575_v15 = vld [vmem:[%s3437_s1 + $0x5c8] ss:$16 sps:$4 sm:$0xff]   ;;  %v2580_v16 = vld [vmem:[%s3437_s1 + $0x5e4] ss:$16 sps:$4 sm:$0xff]  }
  0xa9   :  { %v2583_v17 = vld [vmem:[%s3437_s1 + $0x5ec] ss:$16 sps:$4 sm:$0xff]   ;;  %v2578_v18 = vld [vmem:[%s3437_s1 + $0x5e0] ss:$16 sps:$4 sm:$0xff]   ;;  %v2581_v20 = vld [vmem:[%s3437_s1 + $0x5e8] ss:$16 sps:$4 sm:$0xff]  }
  0xaa   :  { %v2587_v21 = vld [vmem:[%s3437_s1 + $0x604] ss:$16 sps:$4 sm:$0xff]   ;;  %v2590_v23 = vld [vmem:[%s3437_s1 + $0x60c] ss:$16 sps:$4 sm:$0xff]   ;;  %v2585_v24 = vld [vmem:[%s3437_s1 + $0x600] ss:$16 sps:$4 sm:$0xff]  }
  0xab   :  { %1394 = vmatpush1.bf16.msra.mxu0 %v2548_v61  ;;  %1558 = vmatpush1.bf16.msra.mxu1 %v2551_v62  ;;  %v2588_v25 = vld [vmem:[%s3437_s1 + $0x608] ss:$16 sps:$4 sm:$0xff]   ;;  %v2593_v26 = vld [vmem:[%s3437_s1 + $0x624] ss:$16 sps:$4 sm:$0xff]   ;;  %v2596_v12 = vld [vmem:[%s3437_s1 + $0x62c] ss:$16 sps:$4 sm:$0xff]  }
  0xac   :  { %1395 = vmatprep.subr.bf16.mxu0 %v2556_v63  ;;  %1559 = vmatprep.subr.bf16.mxu1 %v2559_v0  ;;  %v2591_v27 = vld [vmem:[%s3437_s1 + $0x620] ss:$16 sps:$4 sm:$0xff]   ;;  %v2594_v28 = vld [vmem:[%s3437_s1 + $0x628] ss:$16 sps:$4 sm:$0xff]   ;;  %v2654_v30 = vmov 0   ;;  %vm1287_vm0 = vcmask 261120  }
  0xad   :  { %v2597_v29 = vld [vmem:[%s3439_s3 + $0x40] sm:$0xff]   ;;  %v2601_v35 = vld [vmem:[%s3439_s3 + $0x48] sm:$0xff]   ;;  %v2605_v37 = vld [vmem:[%s3439_s3 + $0x50] sm:$0xff]   ;;  %v228_v63 = vsub.s32 0, %v2803_v42  ;;  %v236_v0 = vsub.s32 2, %v2803_v42  ;;  %s2655_s27 = smov [#allocation2]  }
  0xae   :  { %v2599_v33 = vld [vmem:[%s3439_s3] sm:$0xff]   ;;  %v2602_v19 = vld [vmem:[%s3439_s3 + $0xc8] sm:$0xff]   ;;  %v2606_v38 = vld [vmem:[%s3439_s3 + $0xd0] sm:$0xff]   ;;  %s1977_s28 = sshll.u32 %s2655_s27, 4  ;;  %s1978_s28 = int_to_ptr.vmem [resolvable:$true] %s1977_s28 }
  0xaf   :  { %1396 = vmatpush1.bf16.msra.mxu0 %v2554_v1  ;;  %1560 = vmatpush1.bf16.msra.mxu1 %v2557_v2  ;;  %v2600_v34 = vld [vmem:[%s3439_s3 + $0x80] sm:$0xff]   ;;  %v2603_v49 = vld [vmem:[%s3439_s3 + $0x8] sm:$0xff]   ;;  %v2607_v39 = vld [vmem:[%s3439_s3 + $0x10] sm:$0xff]   ;;  %v232_v2 = vsub.s32 1, %v2803_v42  ;;  %s2629_s29 = scalar_lea.vmem %s1978_s28, 64  ;;  %p2634_p1 = scmp.lt.s32.totalorder %s1978_s28, %s1978_s28 }
  0xb0   :  { %1397 = vmatprep.subr.bf16.mxu0 %v2562_v3  ;;  %1561 = vmatprep.subr.bf16.mxu1 %v2565_v4  ;;  %v2604_v36 = vld [vmem:[%s3439_s3 + $0x88] sm:$0xff]   ;;  %v2608_v40 = vld [vmem:[%s3439_s3 + $0x90] sm:$0xff]   ;;  %v2609_v41 = vld [vmem:[%s3439_s3 + $0x58] sm:$0xff]   ;;  %v240_v3 = vsub.s32 3, %v2803_v42  ;;  %p2630_p0 = scmp.ne.s32.totalorder %s1978_s28, %s2629_s29  ;;  %p2635_p2 = scmp.lt.s32.totalorder %s2629_s29, %s2629_s29 }
  0xb1   :  { %v2610_v43 = vld [vmem:[%s3439_s3 + $0xd8] sm:$0xff]   ;;  %v2613_v46 = vld [vmem:[%s3439_s3 + $0x60] sm:$0xff]   ;;  %v2617_v51 = vld [vmem:[%s3439_s3 + $0x68] sm:$0xff]  }
  0xb2   :  { %v2611_v44 = vld [vmem:[%s3439_s3 + $0x18] sm:$0xff]   ;;  %v2614_v47 = vld [vmem:[%s3439_s3 + $0xe0] sm:$0xff]   ;;  %v2618_v52 = vld [vmem:[%s3439_s3 + $0xe8] sm:$0xff]   ;;  %p2636_p3 = por %p2635_p2, %p2634_p1 }
  0xb3   :  { %1398 = vmatpush1.bf16.msra.mxu0 %v2560_v5  ;;  %1562 = vmatpush1.bf16.msra.mxu1 %v2563_v6  ;;  %v2612_v45 = vld [vmem:[%s3439_s3 + $0x98] sm:$0xff]   ;;  %v2615_v48 = vld [vmem:[%s3439_s3 + $0x20] sm:$0xff]   ;;  %v2619_v53 = vld [vmem:[%s3439_s3 + $0x28] sm:$0xff]  }
  0xb4   :  { %1399 = vmatprep.subr.bf16.mxu0 %v2568_v7  ;;  %1563 = vmatprep.subr.bf16.mxu1 %v2571_v8  ;;  %v2616_v50 = vld [vmem:[%s3439_s3 + $0xa0] sm:$0xff]   ;;  %v2620_v54 = vld [vmem:[%s3439_s3 + $0xa8] sm:$0xff]   ;;  %v2621_v55 = vld [vmem:[%s3439_s3 + $0x70] sm:$0xff]   ;;  %p2637_p4 = pnand %p2636_p3, %p2630_p0 }
  0xb5   :  { %v2622_v56 = vld [vmem:[%s3439_s3 + $0xf0] sm:$0xff]   ;;  %v2625_v59 = vld [vmem:[%s3439_s3 + $0x78] sm:$0xff]   ;;  %v224_v1 = vld [vmem:[%s3438_s2] sm:$0xf] }
  0xb6   :  { %v2623_v57 = vld [vmem:[%s3439_s3 + $0x30] sm:$0xff]   ;;  %v2626_v60 = vld [vmem:[%s3439_s3 + $0xf8] sm:$0xff]   ;;  %v229_v4 = vrot.slane %v224_v1, %v228_v63  ;;  %v237_v5 = vrot.slane %v224_v1, %v236_v0  ;;  %v233_v6 = vrot.slane %v224_v1, %v232_v2  ;;  %v241_v7 = vrot.slane %v224_v1, %v240_v3 }
  0xb7   :  { %1400 = vmatpush1.bf16.msra.mxu0 %v2566_v9  ;;  %1564 = vmatpush1.bf16.msra.mxu1 %v2569_v10  ;;  %v2624_v58 = vld [vmem:[%s3439_s3 + $0xb0] sm:$0xff]   ;;  %v2627_v61 = vld [vmem:[%s3439_s3 + $0x38] sm:$0xff]  }
  0xb8   :  { %1401 = vmatprep.subr.bf16.mxu0 %v2574_v11  ;;  %1565 = vmatprep.subr.bf16.mxu1 %v2577_v13  ;;  %v2628_v62 = vld [vmem:[%s3439_s3 + $0xb8] sm:$0xff]  }
  0xbb   :  { %1402 = vmatpush1.bf16.msra.mxu0 %v2572_v14  ;;  %1566 = vmatpush1.bf16.msra.mxu1 %v2575_v15 }
  0xbc   :  { %1403 = vmatprep.subr.bf16.mxu0 %v2580_v16  ;;  %1567 = vmatprep.subr.bf16.mxu1 %v2583_v17 }
  0xbf   :  { %1404 = vmatpush1.bf16.msra.mxu0 %v2578_v18  ;;  %1568 = vmatpush1.bf16.msra.mxu1 %v2581_v20 }
  0xc0   :  { %1414 = vmatprep.subr.bf16.mxu0 %v2587_v21  ;;  %1578 = vmatprep.subr.bf16.mxu1 %v2590_v23 }
  0xc2   :  { %1406 = vmatmul.mubr.bf16.vlgmr.msra.gmra.mrb[0].mxu0 %v3109_v22  ;;  %1570 = vmatmul.mubr.bf16.vlgmr.msra.gmra.mrb[0].mxu1 %v3109_v22  ;;  %v2598_v22 = vld [vmem:[%s3439_s3 + $0xc0] sm:$0xff]  }
  0xc3   :  { %1415 = vmatpush1.bf16.msra.mxu0 %v2585_v24  ;;  %1579 = vmatpush1.bf16.msra.mxu1 %v2588_v25 }
  0xc4   :  { %1416 = vmatprep.subr.bf16.mxu0 %v2593_v26  ;;  %1580 = vmatprep.subr.bf16.mxu1 %v2596_v12 }
  0xc5   :  { %1446 = vmatprep.mubr.bf16.mxu0 %v2654_v30  ;;  %1610 = vmatprep.mubr.bf16.mxu1 %v2654_v30  ;;  %v2187_v30 = vld [vmem:[%s3440_s4] ss:$0 sm:$0xff] }
  0xc7   :  { %1417 = vmatpush1.bf16.msra.mxu0 %v2591_v27  ;;  %1581 = vmatpush1.bf16.msra.mxu1 %v2594_v28 }
  0xc8   :  { %2220 = vmatprep.subr.bf16.mxu0 %v2597_v29  ;;  %2242 = vmatprep.subr.bf16.mxu1 %v2598_v22 }
  0xce   :  { %2185 = vmatmul.mubr.msk.bf16.vlgmr.msra.gmra.mrb[0].mxu0 %vm1287_vm0, %v279_v32  ;;  %2186 = vmatmul.mubr.msk.bf16.vlgmr.msra.gmra.mrb[0].mxu1 %vm1287_vm0, %v279_v32 }
  0xcf   :  { %2221 = vmatpush3.bf16.msra.mxu0 %v2599_v33  ;;  %2243 = vmatpush3.bf16.msra.mxu1 %v2600_v34 }
  0xd0   :  { %2222 = vmatprep.subr.bf16.mxu0 %v2601_v35  ;;  %2244 = vmatprep.subr.bf16.mxu1 %v2602_v19 }
  0xd3   :  { %2223 = vmatpush3.bf16.msra.mxu0 %v2603_v49  ;;  %2245 = vmatpush3.bf16.msra.mxu1 %v2604_v36 }
  0xd4   :  { %2224 = vmatprep.subr.bf16.mxu0 %v2605_v37  ;;  %2246 = vmatprep.subr.bf16.mxu1 %v2606_v38 }
  0xd7   :  { %2225 = vmatpush3.bf16.msra.mxu0 %v2607_v39  ;;  %2247 = vmatpush3.bf16.msra.mxu1 %v2608_v40 }
  0xd8   :  { %2226 = vmatprep.subr.bf16.mxu0 %v2609_v41  ;;  %2248 = vmatprep.subr.bf16.mxu1 %v2610_v43 }
  0xdb   :  { %2227 = vmatpush3.bf16.msra.mxu0 %v2611_v44  ;;  %2249 = vmatpush3.bf16.msra.mxu1 %v2612_v45 }
  0xdc   :  { %2228 = vmatprep.subr.bf16.mxu0 %v2613_v46  ;;  %2250 = vmatprep.subr.bf16.mxu1 %v2614_v47 }
  0xdf   :  { %2229 = vmatpush3.bf16.msra.mxu0 %v2615_v48  ;;  %2251 = vmatpush3.bf16.msra.mxu1 %v2616_v50 }
  0xe0   :  { %2230 = vmatprep.subr.bf16.mxu0 %v2617_v51  ;;  %2252 = vmatprep.subr.bf16.mxu1 %v2618_v52 }
  0xe3   :  { %2231 = vmatpush3.bf16.msra.mxu0 %v2619_v53  ;;  %2253 = vmatpush3.bf16.msra.mxu1 %v2620_v54 }
  0xe4   :  { %2232 = vmatprep.subr.bf16.mxu0 %v2621_v55  ;;  %2254 = vmatprep.subr.bf16.mxu1 %v2622_v56 }
  0xe7   :  { %2233 = vmatpush3.bf16.msra.mxu0 %v2623_v57  ;;  %2255 = vmatpush3.bf16.msra.mxu1 %v2624_v58 }
  0xe8   :  { %2234 = vmatprep.subr.bf16.mxu0 %v2625_v59  ;;  %2256 = vmatprep.subr.bf16.mxu1 %v2626_v60 }
  0xeb   :  { %2235 = vmatpush3.bf16.msra.mxu0 %v2627_v61  ;;  %2257 = vmatpush3.bf16.msra.mxu1 %v2628_v62 }
 0x1a1   :  { %v1448_v8 = vpop.f32.mrb[0].mxu0  ;;  %v1612_v9 = vpop.f32.mrb[0].mxu1 }
 0x1a2   :  { %v2264_v10 = vadd.f32 %v1448_v8, %v229_v4  ;;  %v2266_v11 = vadd.f32 %v1612_v9, %v237_v5  ;;  %v1450_v13 = vpop.f32.mrb[1].mxu0  ;;  %v1614_v14 = vpop.f32.mrb[1].mxu1 }
 0x1a3   :  { %v2265_v15 = vadd.f32 %v1450_v13, %v233_v6  ;;  %v2267_v16 = vadd.f32 %v1614_v14, %v241_v7  ;;  %v1452_v17 = vpop.f32.mrb[2].mxu0  ;;  %v1616_v18 = vpop.f32.mrb[2].mxu1 }
 0x1a4   :  { %v1619_v20 = vmax.f32 %v2264_v10, 0.0  ;;  %v1621_v21 = vmax.f32 %v2266_v11, 0.0  ;;  %v1453_v23 = vpop.f32.mrb[3].mxu0  ;;  %v1617_v24 = vpop.f32.mrb[3].mxu1 }
 0x1a5   :  { %v1620_v25 = vmax.f32 %v2265_v15, 0.0  ;;  %v1622_v42 = vmax.f32 %v2267_v16, 0.0 }
 0x1a6   :  { %v1623_v27 = vpack.c.bf16 %v1619_v20, %v1619_v20  ;;  %v1625_v28 = vpack.c.bf16 %v1621_v21, %v1621_v21 }
 0x1a7   :  { %v1624_v26 = vpack.c.bf16 %v1620_v25, %v1620_v25  ;;  %v1626_v12 = vpack.c.bf16 %v1622_v42, %v1622_v42 }
 0x1a9   :  { %1922 = vmatprep.mubr.bf16.mxu0 %v1624_v26  ;;  %1962 = vmatprep.mubr.bf16.mxu1 %v1626_v12 }
 0x1aa   :  { %1923 = vmatmul.mubr.bf16.vlgmr.msra.gmra.mrb[4].mxu0 %v1623_v27  ;;  %1963 = vmatmul.mubr.bf16.vlgmr.msra.gmra.mrb[4].mxu1 %v1625_v28 }
 0x27d   :  { %v2236_v29 = vpop.f32.mrb[4].mxu0  ;;  %v2258_v22 = vpop.f32.mrb[4].mxu1 }
 0x27e   :  { %v2237_v31 = vpop.f32.mrb[5].mxu0  ;;  %v2259_v32 = vpop.f32.mrb[5].mxu1 }
 0x27f   :  { %v2238_v33 = vadd.f32 %v2237_v31, %v2236_v29  ;;  %v2260_v34 = vadd.f32 %v2259_v32, %v2258_v22  ;;  %v2239_v35 = vpop.f32.mrb[6].mxu0  ;;  %v2261_v19 = vpop.f32.mrb[6].mxu1 }
 0x280   :  { %v2240_v49 = vpop.f32.mrb[7].mxu0  ;;  %v2262_v36 = vpop.f32.mrb[7].mxu1 }
 0x281   :  { %v1925_v37 = vadd.f32 %v2238_v33, %v2187_v30 }
 0x283   :  { %v1965_v38 = vadd.f32 %v2260_v34, %v1925_v37 }
 0x285   :  { %1970 = vst [vmem:[#allocation2] sm:$0xf] %v1965_v38 }
 0x286   :  { %2640 = shalt.err (!%p2637_p4)
}
 0x287   :  { %s2641_s6 = scalar_lea.hbm %s3441_s5, 64 }
 0x288   :  { %p2642_p5 = scmp.ne.s32.totalorder %s3441_s5, %s2641_s6  ;;  %p2645_p6 = scmp.lt.u32.totalorder %s2641_s6, %s3441_s5 }
 0x28a   :  { %p2647_p7 = pnand %p2645_p6, %p2642_p5 }
 0x28c   :  { %2650 = shalt.err (!%p2647_p7)
}
 0x28d   :  { %1980 = dma.vmem_to_hbm [thread:$0]  %s1978_s28, 64, %s3441_s5, [#allocation3]  }
 0x28e   :  { %2651 = dma.done.wait [#allocation3], 64  }
 0x28f   :  { %2652 = vsyncadd [#allocation3], 4294967232 }
 0x290   :  { %1984 = vsyncpa [#allocation3], 1 }

</bundles_post_ra>
